<compile_context>
chip_gen: v7x
topology: tpu7x:2x2x1
jax: 0.10.0
libtpu: 0.0.40
codegen_flags: <defaults>
</compile_context>

<pallas_src>
import functools
import math

import jax
import jax.numpy as jnp
from jax.experimental import pallas as pl
from jax.experimental.pallas import tpu as pltpu


_WGT_DTYPE = jnp.bfloat16      # weight storage + MXU operand dtype
_ACT_DTYPE = jnp.bfloat16      # inter-kernel activation dtype


def _default_vmem_limit():
    # v5e/v6e: 128 MiB physical -> ~96 MiB budget; v7x: 64 MiB -> ~48 MiB budget.
    try:
        info = pltpu.get_tpu_info()
        cap = getattr(info, "vmem_capacity_bytes", None)
        if cap:
            return min(int(cap) * 3 // 4, 112 * 1024 * 1024)
    except Exception:
        pass
    return 48 * 1024 * 1024


_VMEM_LIMIT = _default_vmem_limit()


def _cparams(sem):
    return pltpu.CompilerParams(dimension_semantics=sem,
                                vmem_limit_bytes=_VMEM_LIMIT)


def _pick_tile(dim, target, align):
    """Largest tile <= target that is a multiple of `align` and divides `dim`.
    Falls back to the full dimension (always a legal block size)."""
    if dim <= target or dim % align != 0:
        return dim
    t = (target // align) * align
    while t >= align and dim % t != 0:
        t -= align
    return t if t >= align else dim


# -----------------------------------------------------------------------------
# Fused attention block:  QKV proj -> per-head attention -> out proj + res + LN
# -----------------------------------------------------------------------------
def _attn_block_kernel(klen_ref, x_ref, kvx_ref,
                       wq_ref, bq_ref, wk_ref, bk_ref, wv_ref, bv_ref,
                       wo_ref, bo_ref, g_ref, beta_ref, o_ref, *, causal):
    b = pl.program_id(0)
    klen = klen_ref[b]

    x = x_ref[0]                      # [Sq, E]  bf16
    kvx = kvx_ref[0]                  # [Sk, E]  bf16
    Sq = x.shape[0]
    Sk = kvx.shape[0]
    E = x.shape[1]
    heads = wq_ref.shape[0]

    # Additive mask built on-chip (shared by all heads).
    kidx = jax.lax.broadcasted_iota(jnp.int32, (Sq, Sk), 1)
    masked = kidx >= klen
    if causal:
        qidx = jax.lax.broadcasted_iota(jnp.int32, (Sq, Sk), 0)
        masked = masked | (kidx > qidx)
    bias = jnp.where(masked, -1e9, 0.0)                       # f32 [Sq, Sk]

    acc = jnp.zeros((Sq, E), jnp.float32)
    for h in range(heads):
        # per-head projections via head-major weight refs (free leading-axis idx)
        q_h = (jnp.dot(x, wq_ref[h], preferred_element_type=jnp.float32)
               + bq_ref[h]).astype(_WGT_DTYPE)                # scale folded in wq
        k_h = (jnp.dot(kvx, wk_ref[h], preferred_element_type=jnp.float32)
               + bk_ref[h]).astype(_WGT_DTYPE)
        v_h = (jnp.dot(kvx, wv_ref[h], preferred_element_type=jnp.float32)
               + bv_ref[h]).astype(_WGT_DTYPE)
        s = jax.lax.dot_general(q_h, k_h, (((1,), (1,)), ((), ())),
                                preferred_element_type=jnp.float32)
        s = s + bias
        s = s - jnp.max(s, axis=-1, keepdims=True)
        p = jnp.exp(s)
        p = p * pl.reciprocal(jnp.sum(p, axis=-1, keepdims=True), approx=True)
        ctx_h = jnp.dot(p.astype(_WGT_DTYPE), v_h,
                        preferred_element_type=jnp.float32)    # [Sq, dk]
        acc = acc + jnp.dot(ctx_h.astype(_WGT_DTYPE), wo_ref[h],
                            preferred_element_type=jnp.float32)

    # output bias + residual + LayerNorm (post-norm, matching the reference)
    y = acc + bo_ref[...] + x.astype(jnp.float32)
    mu = jnp.mean(y, axis=-1, keepdims=True)
    yc = y - mu
    var = jnp.mean(yc * yc, axis=-1, keepdims=True)
    out = yc * jax.lax.rsqrt(var + 1e-6) * g_ref[...] + beta_ref[...]
    o_ref[0] = out.astype(o_ref.dtype)


def attn_block(p, ln_g, ln_b, q_x, kv_x, klen, causal):
    B, Sq, E = q_x.shape
    Sk = kv_x.shape[1]

    def _xmap(b, kl):
        return (b, 0, 0)

    def _wspec(arr):
        zeros = (0,) * arr.ndim

        def imap(b, kl):
            return zeros
        return pl.BlockSpec(arr.shape, imap)

    kernel = functools.partial(_attn_block_kernel, causal=causal)
    grid_spec = pltpu.PrefetchScalarGridSpec(
        num_scalar_prefetch=1,
        grid=(B,),
        in_specs=[pl.BlockSpec((1, Sq, E), _xmap),
                  pl.BlockSpec((1, Sk, E), _xmap),
                  _wspec(p["wq"]), _wspec(p["bq"]),
                  _wspec(p["wk"]), _wspec(p["bk"]),
                  _wspec(p["wv"]), _wspec(p["bv"]),
                  _wspec(p["wo"]), _wspec(p["bo"]),
                  _wspec(ln_g), _wspec(ln_b)],
        out_specs=pl.BlockSpec((1, Sq, E), _xmap),
    )
    return pl.pallas_call(
        kernel,
        grid_spec=grid_spec,
        out_shape=jax.ShapeDtypeStruct((B, Sq, E), _ACT_DTYPE),
        compiler_params=_cparams(("parallel",)),
    )(klen.astype(jnp.int32), q_x, kv_x,
      p["wq"], p["bq"], p["wk"], p["bk"], p["wv"], p["bv"],
      p["wo"], p["bo"], ln_g, ln_b)


# -----------------------------------------------------------------------------
# PositionwiseFeedForward:  out = w2(relu(w1(LN(x)))) + x   (hidden dim tiled)
# -----------------------------------------------------------------------------
def _ffn_kernel(x_ref, g_ref, b_ref, w1_ref, b1_ref, w2_ref, b2_ref,
                o_ref, acc_ref):
    j = pl.program_id(1)

    @pl.when(j == 0)
    def _():
        acc_ref[...] = jnp.zeros_like(acc_ref)

    x = x_ref[...].astype(jnp.float32)
    mu = jnp.mean(x, axis=-1, keepdims=True)
    xc = x - mu
    var = jnp.mean(xc * xc, axis=-1, keepdims=True)
    xn = (xc * jax.lax.rsqrt(var + 1e-6) * g_ref[...] + b_ref[...]).astype(_WGT_DTYPE)

    h = jnp.maximum(jnp.dot(xn, w1_ref[...], preferred_element_type=jnp.float32)
                    + b1_ref[...], 0.0)
    acc_ref[...] += jnp.dot(h.astype(_WGT_DTYPE), w2_ref[...],
                            preferred_element_type=jnp.float32)

    @pl.when(j == pl.num_programs(1) - 1)
    def _():
        o_ref[...] = (acc_ref[...] + b2_ref[...] + x).astype(o_ref.dtype)


def ffn(x, p, row_tile=1024, f_tile=512):
    B, S, E = x.shape
    M = B * S
    F = p["w1"].shape[1]
    x2d = x.reshape(M, E)
    tm = _pick_tile(M, row_tile, 8)
    tf = _pick_tile(F, f_tile, 128)
    out = pl.pallas_call(
        _ffn_kernel,
        grid=(M // tm, F // tf),
        in_specs=[pl.BlockSpec((tm, E), lambda i, j: (i, 0)),
                  pl.BlockSpec((1, E), lambda i, j: (0, 0)),
                  pl.BlockSpec((1, E), lambda i, j: (0, 0)),
                  pl.BlockSpec((E, tf), lambda i, j: (0, j)),
                  pl.BlockSpec((1, tf), lambda i, j: (0, j)),
                  pl.BlockSpec((tf, E), lambda i, j: (j, 0)),
                  pl.BlockSpec((1, E), lambda i, j: (0, 0))],
        out_specs=pl.BlockSpec((tm, E), lambda i, j: (i, 0)),
        out_shape=jax.ShapeDtypeStruct((M, E), _ACT_DTYPE),
        scratch_shapes=[pltpu.VMEM((tm, E), jnp.float32)],
        compiler_params=_cparams(("parallel", "arbitrary")),
    )(x2d, p["g"], p["b"], p["w1"], p["b1"], p["w2"], p["b2"])
    return out.reshape(B, S, E)


# -----------------------------------------------------------------------------
# Fused GGNN: node projection + n_steps of (message passing + GRU gate)
# -----------------------------------------------------------------------------
def _ggnn_kernel(type_ref, tok_ref, attr_ref, a_ref, mtype_ref, mtok_ref,
                 w_in_ref, b_in_ref, w_out_ref, b_out_ref, wg_ref, bg_ref,
                 o_ref, *, n_steps):
    ne = w_in_ref.shape[0]
    # node_val = type_rep @ M_type + token_rep @ M_token + attr_rep
    h = (jnp.dot(type_ref[0], mtype_ref[...], preferred_element_type=jnp.float32)
         + jnp.dot(tok_ref[0], mtok_ref[...], preferred_element_type=jnp.float32)
         + attr_ref[0].astype(jnp.float32))                    # [N, E] f32

    for _ in range(n_steps):
        hb = h.astype(_WGT_DTYPE)
        a_in = jnp.zeros_like(h)
        a_out = jnp.zeros_like(h)
        for e in range(ne):
            s_in = (jnp.dot(hb, w_in_ref[e], preferred_element_type=jnp.float32)
                    + b_in_ref[e]).astype(_WGT_DTYPE)
            s_out = (jnp.dot(hb, w_out_ref[e], preferred_element_type=jnp.float32)
                     + b_out_ref[e]).astype(_WGT_DTYPE)
            a_in = a_in + jnp.dot(a_ref[0, e], s_in,
                                  preferred_element_type=jnp.float32)
            a_out = a_out + jnp.dot(a_ref[0, ne + e], s_out,
                                    preferred_element_type=jnp.float32)

        ainb = a_in.astype(_WGT_DTYPE)
        aoutb = a_out.astype(_WGT_DTYPE)

        def _gate(idx, h_part):
            return (jnp.dot(ainb, wg_ref[idx, 0], preferred_element_type=jnp.float32)
                    + jnp.dot(aoutb, wg_ref[idx, 1], preferred_element_type=jnp.float32)
                    + jnp.dot(h_part, wg_ref[idx, 2], preferred_element_type=jnp.float32)
                    + bg_ref[idx])

        r = jax.nn.sigmoid(_gate(0, hb))
        z = jax.nn.sigmoid(_gate(1, hb))
        hh = jnp.tanh(_gate(2, (r * h).astype(_WGT_DTYPE)))
        h = (1.0 - z) * h + z * hh

    o_ref[0] = h.astype(o_ref.dtype)


def ggnn(p, type_rep, token_rep, attr_rep, edge_matrix, n_steps, n_edge_types):
    B, N, E = attr_rep.shape
    # edge-major adjacency [B, 2*ne, N, N], built once per forward, bf16 (0/1 exact)
    A = edge_matrix.reshape(B, N, 2 * n_edge_types, N).transpose(0, 2, 1, 3)
    A = A.astype(_WGT_DTYPE)

    def _xmap(b):
        return (b, 0, 0)

    def _amap(b):
        return (b, 0, 0, 0)

    def _wspec(arr):
        zeros = (0,) * arr.ndim

        def imap(b):
            return zeros
        return pl.BlockSpec(arr.shape, imap)

    kernel = functools.partial(_ggnn_kernel, n_steps=n_steps)
    return pl.pallas_call(
        kernel,
        grid=(B,),
        in_specs=[pl.BlockSpec((1, N, E), _xmap),
                  pl.BlockSpec((1, N, E), _xmap),
                  pl.BlockSpec((1, N, E), _xmap),
                  pl.BlockSpec((1, 2 * n_edge_types, N, N), _amap),
                  _wspec(p["mtype"]), _wspec(p["mtok"]),
                  _wspec(p["w_in"]), _wspec(p["b_in"]),
                  _wspec(p["w_out"]), _wspec(p["b_out"]),
                  _wspec(p["wg"]), _wspec(p["bg"])],
        out_specs=pl.BlockSpec((1, N, E), _xmap),
        out_shape=jax.ShapeDtypeStruct((B, N, E), _ACT_DTYPE),
        compiler_params=_cparams(("parallel",)),
    )(type_rep, token_rep, attr_rep, A, p["mtype"], p["mtok"],
      p["w_in"], p["b_in"], p["w_out"], p["b_out"], p["wg"], p["bg"])


# -----------------------------------------------------------------------------
# Fused generator + cross-entropy (online log-sum-exp over vocab tiles)
# -----------------------------------------------------------------------------
def _gen_ce_kernel(x_ref, w_ref, b_ref, tgt_ref, o_ref, m_ref, l_ref, t_ref):
    j = pl.program_id(1)
    tv = w_ref.shape[1]

    @pl.when(j == 0)
    def _():
        m_ref[...] = jnp.full_like(m_ref, -jnp.inf)
        l_ref[...] = jnp.zeros_like(l_ref)
        t_ref[...] = jnp.zeros_like(t_ref)

    s = (jnp.dot(x_ref[...], w_ref[...], preferred_element_type=jnp.float32)
         + b_ref[...])                                          # [tm, tv] f32

    # online log-sum-exp
    m_new = jnp.maximum(m_ref[...], jnp.max(s, axis=-1, keepdims=True))
    l_ref[...] = (l_ref[...] * jnp.exp(m_ref[...] - m_new)
                  + jnp.sum(jnp.exp(s - m_new), axis=-1, keepdims=True))
    m_ref[...] = m_new

    # gather the target logit if it falls inside this vocab tile
    col = jax.lax.broadcasted_iota(jnp.int32, s.shape, 1) + j * tv
    hit = col == tgt_ref[...]
    t_ref[...] += jnp.sum(jnp.where(hit, s, 0.0), axis=-1, keepdims=True)

    @pl.when(j == pl.num_programs(1) - 1)
    def _():
        o_ref[...] = m_ref[...] + jnp.log(l_ref[...]) - t_ref[...]


def generator_ce_loss(dec_out2d, targets, gen_w, gen_b,
                      row_tile=1024, vocab_tile=512):
    M, E = dec_out2d.shape
    V = gen_w.shape[1]
    tm = _pick_tile(M, row_tile, 8)
    tv = _pick_tile(V, vocab_tile, 128)
    tgt2d = targets.reshape(M, 1).astype(jnp.int32)
    loss = pl.pallas_call(
        _gen_ce_kernel,
        grid=(M // tm, V // tv),
        in_specs=[pl.BlockSpec((tm, E), lambda i, j: (i, 0)),
                  pl.BlockSpec((E, tv), lambda i, j: (0, j)),
                  pl.BlockSpec((1, tv), lambda i, j: (0, j)),
                  pl.BlockSpec((tm, 1), lambda i, j: (i, 0))],
        out_specs=pl.BlockSpec((tm, 1), lambda i, j: (i, 0)),
        out_shape=jax.ShapeDtypeStruct((M, 1), jnp.float32),
        scratch_shapes=[pltpu.VMEM((tm, 1), jnp.float32),
                        pltpu.VMEM((tm, 1), jnp.float32),
                        pltpu.VMEM((tm, 1), jnp.float32)],
        compiler_params=_cparams(("parallel", "arbitrary")),
    )(dec_out2d, gen_w, gen_b, tgt2d)
    return loss[:, 0]


# -----------------------------------------------------------------------------
# Model building blocks (JAX glue around the fused kernels)
# -----------------------------------------------------------------------------
def encoder_layer(p, x, lengths_src):
    out = attn_block(p["attn"], p["ln_g"], p["ln_b"], x, x, lengths_src,
                     causal=False)
    return ffn(out, p["ffn"])


def decoder_layer(p, x, memory, gnn_nodes, lengths_tgt, lengths_src, lengths_node):
    q = attn_block(p["self_attn"], p["ln1_g"], p["ln1_b"], x, x, lengths_tgt,
                   causal=True)
    mid = attn_block(p["ctx_attn"], p["ln2_g"], p["ln2_b"], q, memory,
                     lengths_src, causal=False)
    gmid = attn_block(p["gnn_attn"], p["ln3_g"], p["ln3_b"], mid, gnn_nodes,
                      lengths_node, causal=False)
    return ffn(gmid, p["ffn"])


def sequence_mask(lengths, max_len):
    return jnp.arange(max_len)[None, :] < lengths[:, None]


# -----------------------------------------------------------------------------
# Parameter init (deterministic, synthetic, head-major / pre-folded layouts)
# -----------------------------------------------------------------------------
def _normal(key, shape, scale=0.02):
    return jax.random.normal(key, shape, jnp.float32) * scale


def init_attn(key, E, H, dk):
    ks = jax.random.split(key, 4)
    qscale = 1.0 / math.sqrt(dk)          # folded into wq / bq at init
    return dict(
        wq=(_normal(ks[0], (H, E, dk)) * qscale).astype(_WGT_DTYPE),
        bq=jnp.zeros((H, 1, dk), jnp.float32),
        wk=_normal(ks[1], (H, E, dk)).astype(_WGT_DTYPE),
        bk=jnp.zeros((H, 1, dk), jnp.float32),
        wv=_normal(ks[2], (H, E, dk)).astype(_WGT_DTYPE),
        bv=jnp.zeros((H, 1, dk), jnp.float32),
        wo=_normal(ks[3], (H, dk, E)).astype(_WGT_DTYPE),
        bo=jnp.zeros((1, E), jnp.float32),
    )


def init_ffn(key, E, F):
    k1, k2 = jax.random.split(key)
    return dict(g=jnp.ones((1, E), jnp.float32), b=jnp.zeros((1, E), jnp.float32),
                w1=_normal(k1, (E, F)).astype(_WGT_DTYPE),
                b1=jnp.zeros((1, F), jnp.float32),
                w2=_normal(k2, (F, E)).astype(_WGT_DTYPE),
                b2=jnp.zeros((1, E), jnp.float32))


def init_params(key, cfg):
    E, H, dk, F = cfg["emsize"], cfg["num_head"], cfg["d_k"], cfg["d_ff"]
    V, TV, AV = cfg["vocab_size"], cfg["type_vocab_size"], cfg["attr_vocab_size"]
    keys = jax.random.split(key, 16)

    def emb(k, n):
        e = _normal(k, (n, E))
        return e.at[0].set(0.0)            # padding_idx = PAD = 0

    p = dict(
        word_emb=emb(keys[0], V),
        type_emb=emb(keys[1], TV),
        attr_emb=emb(keys[2], AV),
        src_pos_emb=_normal(keys[3], (cfg["max_src_len"], E)),
        tgt_pos_emb=_normal(keys[4], (cfg["max_tgt_len"] + 2, E)),
        gen_w=_normal(keys[7], (E, V)).astype(_WGT_DTYPE),
        gen_b=jnp.zeros((1, V), jnp.float32),
    )

    enc_layers = []
    for i in range(cfg["nlayers"]):
        k1, k2 = jax.random.split(jax.random.fold_in(keys[8], i))
        enc_layers.append(dict(attn=init_attn(k1, E, H, dk),
                               ln_g=jnp.ones((1, E), jnp.float32),
                               ln_b=jnp.zeros((1, E), jnp.float32),
                               ffn=init_ffn(k2, E, F)))
    p["enc_layers"] = enc_layers

    dec_layers = []
    for i in range(cfg["nlayers"]):
        k1, k2, k3, k4 = jax.random.split(jax.random.fold_in(keys[9], i), 4)
        dec_layers.append(dict(
            self_attn=init_attn(k1, E, H, dk),
            ln1_g=jnp.ones((1, E), jnp.float32), ln1_b=jnp.zeros((1, E), jnp.float32),
            ctx_attn=init_attn(k2, E, H, dk),
            ln2_g=jnp.ones((1, E), jnp.float32), ln2_b=jnp.zeros((1, E), jnp.float32),
            gnn_attn=init_attn(k3, E, H, dk),
            ln3_g=jnp.ones((1, E), jnp.float32), ln3_b=jnp.zeros((1, E), jnp.float32),
            ffn=init_ffn(k4, E, F)))
    p["dec_layers"] = dec_layers

    ne = cfg["n_edge_types"]
    gk = jax.random.split(keys[10], 6)
    p["ggnn"] = dict(
        mtype=_normal(gk[0], (E, E)).astype(_WGT_DTYPE),     # M_type (bias=False)
        mtok=_normal(gk[1], (E, E)).astype(_WGT_DTYPE),      # M_token (bias=False)
        w_in=_normal(gk[2], (ne, E, E)).astype(_WGT_DTYPE),
        b_in=jnp.zeros((ne, 1, E), jnp.float32),
        w_out=_normal(gk[3], (ne, E, E)).astype(_WGT_DTYPE),
        b_out=jnp.zeros((ne, 1, E), jnp.float32),
        # gate weights [gate(r,z,t), input(a_in,a_out,h), E, E]
        wg=_normal(gk[4], (3, 3, E, E)).astype(_WGT_DTYPE),
        bg=jnp.zeros((3, 1, E), jnp.float32),
    )
    return p


# -----------------------------------------------------------------------------
# Full forward pass (_run_forward_ml, mode='train')
# -----------------------------------------------------------------------------
def transformer_forward(params, cfg, data):
    E = cfg["emsize"]
    B, S = data["vec_src"].shape
    T = data["vec_tgt"].shape[1]
    N = data["vec_attrs"].shape[1]

    # ---- Embedder (encoder mode): word emb + absolute positional emb --------
    src_rep = (jnp.take(params["word_emb"], data["vec_src"], axis=0)
               + params["src_pos_emb"][:S][None, :, :])
    out = src_rep.astype(_ACT_DTYPE)

    # ---- Encoder -------------------------------------------------------------
    for lp in params["enc_layers"]:
        out = encoder_layer(lp, out, data["lengths_src"])
    memory_bank = out                                     # use_all_enc_layers=False

    # ---- Build node features (vectorized, jittable) -------------------------
    node_idx = jnp.arange(N, dtype=jnp.int32)[None, :]                   # [1, N]
    lt = data["lengths_type"][:, None].astype(jnp.int32)
    lk = data["lengths_token"][:, None].astype(jnp.int32)
    t_idx = jnp.broadcast_to(jnp.minimum(node_idx, data["vec_type"].shape[1] - 1),
                             (B, N))
    vec_full_type = jnp.where(
        node_idx < lt, jnp.take_along_axis(data["vec_type"], t_idx, axis=1), 0)
    k_idx = jnp.clip(node_idx - lt, 0, data["vec_token"].shape[1] - 1)
    vec_full_token = jnp.where(
        (node_idx >= lt) & (node_idx < lt + lk),
        jnp.take_along_axis(data["vec_token"], k_idx, axis=1), 0)

    type_rep = jnp.take(params["type_emb"], vec_full_type, axis=0).astype(_ACT_DTYPE)
    token_rep = jnp.take(params["word_emb"], vec_full_token, axis=0).astype(_ACT_DTYPE)
    attr_rep = jnp.take(params["attr_emb"], data["vec_attrs"], axis=0).astype(_ACT_DTYPE)

    # ---- GGNN (node projection + propagation fully fused in one call) -------
    gnn_nodes = ggnn(params["ggnn"], type_rep, token_rep, attr_rep,
                     data["edge_matrix"], cfg["n_steps"], cfg["n_edge_types"])

    # ---- Embedder (decoder mode) ---------------------------------------------
    tgt_emb = (jnp.take(params["word_emb"], data["vec_tgt"], axis=0)
               + params["tgt_pos_emb"][:T][None, :, :])
    dec_out = tgt_emb.astype(_ACT_DTYPE)

    # ---- Decoder (masks built inside the attention kernels from lengths) ----
    for lp in params["dec_layers"]:
        dec_out = decoder_layer(lp, dec_out, memory_bank, gnn_nodes,
                                data["lengths_tgt"], data["lengths_src"],
                                data["lengths_node"])

    # ---- Fused generator + cross-entropy loss (copy_attn=False branch) -------
    dec_slice = dec_out[:, :T - 1, :].reshape(B * (T - 1), E)
    target = data["vec_tgt"][:, 1:].reshape(B * (T - 1))
    ml = generator_ce_loss(dec_slice, target, params["gen_w"], params["gen_b"])
    ml_loss = ml.reshape(B, T - 1)
    loss = {
        "ml_loss": ml_loss,
        "loss_per_token": ml_loss / data["lengths_tgt"][:, None].astype(jnp.float32),
    }
    attns = None  # TODO(synk): per-head attention maps not returned from the fused kernel
    return loss, attns


# -----------------------------------------------------------------------------
# Demo
# -----------------------------------------------------------------------------
if __name__ == "__main__":
    cfg = dict(
        vocab_size=50, type_vocab_size=20, attr_vocab_size=20,
        emsize=32, nlayers=2, num_head=4, d_k=8, d_v=8, d_ff=64,
        max_src_len=64, max_tgt_len=32,
        n_edge_types=2, n_steps=5,
    )
    PAD, BOS = 0, 2
    B, S, T, N_NODES = 2, 16, 8, 10

    key = jax.random.PRNGKey(0)
    pkey, dkey = jax.random.split(key)
    params = init_params(pkey, cfg)

    ks = jax.random.split(dkey, 8)
    lengths_src = jnp.array([16, 12], jnp.int32)
    lengths_tgt = jnp.array([8, 6], jnp.int32)
    lengths_node = jnp.array([10, 7], jnp.int32)
    lengths_type = jnp.array([4, 3], jnp.int32)
    lengths_token = jnp.array([3, 5], jnp.int32)

    vec_src = jax.random.randint(ks[0], (B, S), 3, cfg["vocab_size"], jnp.int32)
    vec_src = jnp.where(sequence_mask(lengths_src, S), vec_src, PAD)

    vec_tgt = jax.random.randint(ks[1], (B, T), 3, cfg["vocab_size"], jnp.int32)
    vec_tgt = vec_tgt.at[:, 0].set(BOS)
    vec_tgt = jnp.where(sequence_mask(lengths_tgt, T), vec_tgt, PAD)

    vec_type = jax.random.randint(ks[2], (B, 6), 1, cfg["type_vocab_size"], jnp.int32)
    vec_token = jax.random.randint(ks[3], (B, 6), 3, cfg["vocab_size"], jnp.int32)
    vec_attrs = jax.random.randint(ks[4], (B, N_NODES), 1, cfg["attr_vocab_size"], jnp.int32)
    vec_attrs = jnp.where(sequence_mask(lengths_node, N_NODES), vec_attrs, PAD)

    edge_matrix = (jax.random.uniform(
        ks[5], (B, N_NODES, N_NODES * cfg["n_edge_types"] * 2)) < 0.3).astype(jnp.float32)

    data = dict(
        vec_src=vec_src, vec_tgt=vec_tgt, vec_type=vec_type, vec_token=vec_token,
        vec_attrs=vec_attrs, edge_matrix=edge_matrix,
        lengths_src=lengths_src, lengths_tgt=lengths_tgt, lengths_node=lengths_node,
        lengths_type=lengths_type, lengths_token=lengths_token,
    )

    loss, attns = transformer_forward(params, cfg, data)
    jax.block_until_ready(loss["ml_loss"])
    jax.block_until_ready(loss["loss_per_token"])
    assert loss["ml_loss"].shape == (B, T - 1)
    assert bool(jnp.isfinite(loss["ml_loss"]).all())
    assert bool(jnp.isfinite(loss["loss_per_token"]).all())
    print("KERNEL_OK")
</pallas_src>

<mosaic_0001>
module attributes {stable_mosaic.version = 11 : i64} {
  func.func @_attn_block_kernel(%arg0: i32, %arg1: memref<2xi32, #tpu.memory_space<smem>>, %arg2: memref<1x16x32xbf16, #tpu.memory_space<vmem>>, %arg3: memref<1x16x32xbf16, #tpu.memory_space<vmem>>, %arg4: memref<4x32x8xbf16, #tpu.memory_space<vmem>>, %arg5: memref<4x1x8xf32, #tpu.memory_space<vmem>>, %arg6: memref<4x32x8xbf16, #tpu.memory_space<vmem>>, %arg7: memref<4x1x8xf32, #tpu.memory_space<vmem>>, %arg8: memref<4x32x8xbf16, #tpu.memory_space<vmem>>, %arg9: memref<4x1x8xf32, #tpu.memory_space<vmem>>, %arg10: memref<4x8x32xbf16, #tpu.memory_space<vmem>>, %arg11: memref<1x32xf32, #tpu.memory_space<vmem>>, %arg12: memref<1x32xf32, #tpu.memory_space<vmem>>, %arg13: memref<1x32xf32, #tpu.memory_space<vmem>>, %arg14: memref<1x16x32xbf16, #tpu.memory_space<vmem>>) attributes {dimension_semantics = [#tpu.dimension_semantics<parallel>], iteration_bounds = array<i64: 2>, scalar_prefetch = 1 : i64, scratch_operands = 0 : i64, tpu.core_type = #tpu.core_type<tc>, window_params = [{transform_indices = @transform_0, window_bounds = array<i64: 1, 16, 32>}, {transform_indices = @transform_1, window_bounds = array<i64: 1, 16, 32>}, {pipeline_mode = #tpu.pipeline_mode<synchronous>, transform_indices = @transform_2, window_bounds = array<i64: 4, 32, 8>}, {pipeline_mode = #tpu.pipeline_mode<synchronous>, transform_indices = @transform_3, window_bounds = array<i64: 4, 1, 8>}, {pipeline_mode = #tpu.pipeline_mode<synchronous>, transform_indices = @transform_4, window_bounds = array<i64: 4, 32, 8>}, {pipeline_mode = #tpu.pipeline_mode<synchronous>, transform_indices = @transform_5, window_bounds = array<i64: 4, 1, 8>}, {pipeline_mode = #tpu.pipeline_mode<synchronous>, transform_indices = @transform_6, window_bounds = array<i64: 4, 32, 8>}, {pipeline_mode = #tpu.pipeline_mode<synchronous>, transform_indices = @transform_7, window_bounds = array<i64: 4, 1, 8>}, {pipeline_mode = #tpu.pipeline_mode<synchronous>, transform_indices = @transform_8, window_bounds = array<i64: 4, 8, 32>}, {pipeline_mode = #tpu.pipeline_mode<synchronous>, transform_indices = @transform_9, window_bounds = array<i64: 1, 32>}, {pipeline_mode = #tpu.pipeline_mode<synchronous>, transform_indices = @transform_10, window_bounds = array<i64: 1, 32>}, {pipeline_mode = #tpu.pipeline_mode<synchronous>, transform_indices = @transform_11, window_bounds = array<i64: 1, 32>}, {transform_indices = @transform_12, window_bounds = array<i64: 1, 16, 32>}]} {
    %0 = arith.index_cast %arg0 : i32 to index
    %1 = memref.load %arg1[%0] : memref<2xi32, #tpu.memory_space<smem>>
    %c0 = arith.constant 0 : index
    %c0_0 = arith.constant 0 : index
    %c0_1 = arith.constant 0 : index
    %2 = vector.load %arg2[%c0, %c0_0, %c0_1] : memref<1x16x32xbf16, #tpu.memory_space<vmem>>, vector<1x16x32xbf16>
    %3 = vector.shape_cast %2 : vector<1x16x32xbf16> to vector<16x32xbf16>
    %c0_2 = arith.constant 0 : index
    %c0_3 = arith.constant 0 : index
    %c0_4 = arith.constant 0 : index
    %4 = vector.load %arg3[%c0_2, %c0_3, %c0_4] : memref<1x16x32xbf16, #tpu.memory_space<vmem>>, vector<1x16x32xbf16>
    %5 = vector.shape_cast %4 : vector<1x16x32xbf16> to vector<16x32xbf16>
    %6 = tpu.iota {dimensions = array<i32: 1>} : vector<16x16xi32>
    %7 = vector.broadcast %1 : i32 to vector<16x16xi32>
    %8 = arith.cmpi sge, %6, %7 : vector<16x16xi32>
    %cst = arith.constant -1.000000e+09 : f32
    %cst_5 = arith.constant 0.000000e+00 : f32
    %9 = vector.broadcast %cst : f32 to vector<16x16xf32>
    %10 = vector.broadcast %cst_5 : f32 to vector<16x16xf32>
    %11 = arith.select %8, %9, %10 : vector<16x16xi1>, vector<16x16xf32>
    %cst_6 = arith.constant 0.000000e+00 : f32
    %12 = vector.broadcast %cst_6 : f32 to vector<16x32xf32>
    %c0_7 = arith.constant 0 : index
    %c0_8 = arith.constant 0 : index
    %c0_9 = arith.constant 0 : index
    %13 = vector.load %arg4[%c0_7, %c0_8, %c0_9] : memref<4x32x8xbf16, #tpu.memory_space<vmem>>, vector<1x32x8xbf16>
    %14 = vector.shape_cast %13 : vector<1x32x8xbf16> to vector<32x8xbf16>
    %cst_10 = arith.constant dense<0.000000e+00> : vector<16x8xf32>
    %15 = tpu.matmul %3, %14, %cst_10 {dimension_numbers = #tpu.dot_dimension_numbers<[1], [0], [0], [1], [0, 0, 1, 1], [], []>} : vector<16x32xbf16>, vector<32x8xbf16>, vector<16x8xf32> -> vector<16x8xf32>
    %c0_11 = arith.constant 0 : index
    %c0_12 = arith.constant 0 : index
    %c0_13 = arith.constant 0 : index
    %16 = vector.load %arg5[%c0_11, %c0_12, %c0_13] : memref<4x1x8xf32, #tpu.memory_space<vmem>>, vector<1x1x8xf32>
    %17 = vector.shape_cast %16 : vector<1x1x8xf32> to vector<1x8xf32>
    %18 = vector.broadcast %17 : vector<1x8xf32> to vector<16x8xf32>
    %19 = arith.addf %15, %18 : vector<16x8xf32>
    %20 = arith.truncf %19 : vector<16x8xf32> to vector<16x8xbf16>
    %c0_14 = arith.constant 0 : index
    %c0_15 = arith.constant 0 : index
    %c0_16 = arith.constant 0 : index
    %21 = vector.load %arg6[%c0_14, %c0_15, %c0_16] : memref<4x32x8xbf16, #tpu.memory_space<vmem>>, vector<1x32x8xbf16>
    %22 = vector.shape_cast %21 : vector<1x32x8xbf16> to vector<32x8xbf16>
    %cst_17 = arith.constant dense<0.000000e+00> : vector<16x8xf32>
    %23 = tpu.matmul %5, %22, %cst_17 {dimension_numbers = #tpu.dot_dimension_numbers<[1], [0], [0], [1], [0, 0, 1, 1], [], []>} : vector<16x32xbf16>, vector<32x8xbf16>, vector<16x8xf32> -> vector<16x8xf32>
    %c0_18 = arith.constant 0 : index
    %c0_19 = arith.constant 0 : index
    %c0_20 = arith.constant 0 : index
    %24 = vector.load %arg7[%c0_18, %c0_19, %c0_20] : memref<4x1x8xf32, #tpu.memory_space<vmem>>, vector<1x1x8xf32>
    %25 = vector.shape_cast %24 : vector<1x1x8xf32> to vector<1x8xf32>
    %26 = vector.broadcast %25 : vector<1x8xf32> to vector<16x8xf32>
    %27 = arith.addf %23, %26 : vector<16x8xf32>
    %28 = arith.truncf %27 : vector<16x8xf32> to vector<16x8xbf16>
    %c0_21 = arith.constant 0 : index
    %c0_22 = arith.constant 0 : index
    %c0_23 = arith.constant 0 : index
    %29 = vector.load %arg8[%c0_21, %c0_22, %c0_23] : memref<4x32x8xbf16, #tpu.memory_space<vmem>>, vector<1x32x8xbf16>
    %30 = vector.shape_cast %29 : vector<1x32x8xbf16> to vector<32x8xbf16>
    %cst_24 = arith.constant dense<0.000000e+00> : vector<16x8xf32>
    %31 = tpu.matmul %5, %30, %cst_24 {dimension_numbers = #tpu.dot_dimension_numbers<[1], [0], [0], [1], [0, 0, 1, 1], [], []>} : vector<16x32xbf16>, vector<32x8xbf16>, vector<16x8xf32> -> vector<16x8xf32>
    %c0_25 = arith.constant 0 : index
    %c0_26 = arith.constant 0 : index
    %c0_27 = arith.constant 0 : index
    %32 = vector.load %arg9[%c0_25, %c0_26, %c0_27] : memref<4x1x8xf32, #tpu.memory_space<vmem>>, vector<1x1x8xf32>
    %33 = vector.shape_cast %32 : vector<1x1x8xf32> to vector<1x8xf32>
    %34 = vector.broadcast %33 : vector<1x8xf32> to vector<16x8xf32>
    %35 = arith.addf %31, %34 : vector<16x8xf32>
    %36 = arith.truncf %35 : vector<16x8xf32> to vector<16x8xbf16>
    %cst_28 = arith.constant dense<0.000000e+00> : vector<16x16xf32>
    %37 = tpu.matmul %20, %28, %cst_28 {dimension_numbers = #tpu.dot_dimension_numbers<[1], [1], [0], [0], [0, 0, 1, 0], [], []>} : vector<16x8xbf16>, vector<16x8xbf16>, vector<16x16xf32> -> vector<16x16xf32>
    %38 = arith.addf %37, %11 : vector<16x16xf32>
    %cst_29 = arith.constant dense<0xFF800000> : vector<16xf32>
    %39 = vector.multi_reduction <maximumf>, %38, %cst_29 [1] : vector<16x16xf32> to vector<16xf32>
    %40 = vector.shape_cast %39 : vector<16xf32> to vector<16x1xf32>
    %41 = vector.broadcast %40 : vector<16x1xf32> to vector<16x16xf32>
    %42 = arith.subf %38, %41 : vector<16x16xf32>
    %43 = math.exp %42 : vector<16x16xf32>
    %cst_30 = arith.constant dense<0.000000e+00> : vector<16xf32>
    %44 = vector.multi_reduction <add>, %43, %cst_30 [1] : vector<16x16xf32> to vector<16xf32>
    %45 = vector.shape_cast %44 : vector<16xf32> to vector<16x1xf32>
    %46 = tpu.reciprocal %45 {approx = true} : vector<16x1xf32> -> vector<16x1xf32>
    %47 = vector.broadcast %46 : vector<16x1xf32> to vector<16x16xf32>
    %48 = arith.mulf %43, %47 : vector<16x16xf32>
    %49 = arith.truncf %48 : vector<16x16xf32> to vector<16x16xbf16>
    %cst_31 = arith.constant dense<0.000000e+00> : vector<16x8xf32>
    %50 = tpu.matmul %49, %36, %cst_31 {dimension_numbers = #tpu.dot_dimension_numbers<[1], [0], [0], [1], [0, 0, 1, 1], [], []>} : vector<16x16xbf16>, vector<16x8xbf16>, vector<16x8xf32> -> vector<16x8xf32>
    %51 = arith.truncf %50 : vector<16x8xf32> to vector<16x8xbf16>
    %c0_32 = arith.constant 0 : index
    %c0_33 = arith.constant 0 : index
    %c0_34 = arith.constant 0 : index
    %52 = vector.load %arg10[%c0_32, %c0_33, %c0_34] : memref<4x8x32xbf16, #tpu.memory_space<vmem>>, vector<1x8x32xbf16>
    %53 = vector.shape_cast %52 : vector<1x8x32xbf16> to vector<8x32xbf16>
    %cst_35 = arith.constant dense<0.000000e+00> : vector<16x32xf32>
    %54 = tpu.matmul %51, %53, %cst_35 {dimension_numbers = #tpu.dot_dimension_numbers<[1], [0], [0], [1], [0, 0, 1, 1], [], []>} : vector<16x8xbf16>, vector<8x32xbf16>, vector<16x32xf32> -> vector<16x32xf32>
    %55 = arith.addf %12, %54 : vector<16x32xf32>
    %c1 = arith.constant 1 : index
    %c0_36 = arith.constant 0 : index
    %c0_37 = arith.constant 0 : index
    %56 = vector.load %arg4[%c1, %c0_36, %c0_37] : memref<4x32x8xbf16, #tpu.memory_space<vmem>>, vector<1x32x8xbf16>
    %57 = vector.shape_cast %56 : vector<1x32x8xbf16> to vector<32x8xbf16>
    %cst_38 = arith.constant dense<0.000000e+00> : vector<16x8xf32>
    %58 = tpu.matmul %3, %57, %cst_38 {dimension_numbers = #tpu.dot_dimension_numbers<[1], [0], [0], [1], [0, 0, 1, 1], [], []>} : vector<16x32xbf16>, vector<32x8xbf16>, vector<16x8xf32> -> vector<16x8xf32>
    %c1_39 = arith.constant 1 : index
    %c0_40 = arith.constant 0 : index
    %c0_41 = arith.constant 0 : index
    %59 = vector.load %arg5[%c1_39, %c0_40, %c0_41] : memref<4x1x8xf32, #tpu.memory_space<vmem>>, vector<1x1x8xf32>
    %60 = vector.shape_cast %59 : vector<1x1x8xf32> to vector<1x8xf32>
    %61 = vector.broadcast %60 : vector<1x8xf32> to vector<16x8xf32>
    %62 = arith.addf %58, %61 : vector<16x8xf32>
    %63 = arith.truncf %62 : vector<16x8xf32> to vector<16x8xbf16>
    %c1_42 = arith.constant 1 : index
    %c0_43 = arith.constant 0 : index
    %c0_44 = arith.constant 0 : index
    %64 = vector.load %arg6[%c1_42, %c0_43, %c0_44] : memref<4x32x8xbf16, #tpu.memory_space<vmem>>, vector<1x32x8xbf16>
    %65 = vector.shape_cast %64 : vector<1x32x8xbf16> to vector<32x8xbf16>
    %cst_45 = arith.constant dense<0.000000e+00> : vector<16x8xf32>
    %66 = tpu.matmul %5, %65, %cst_45 {dimension_numbers = #tpu.dot_dimension_numbers<[1], [0], [0], [1], [0, 0, 1, 1], [], []>} : vector<16x32xbf16>, vector<32x8xbf16>, vector<16x8xf32> -> vector<16x8xf32>
    %c1_46 = arith.constant 1 : index
    %c0_47 = arith.constant 0 : index
    %c0_48 = arith.constant 0 : index
    %67 = vector.load %arg7[%c1_46, %c0_47, %c0_48] : memref<4x1x8xf32, #tpu.memory_space<vmem>>, vector<1x1x8xf32>
    %68 = vector.shape_cast %67 : vector<1x1x8xf32> to vector<1x8xf32>
    %69 = vector.broadcast %68 : vector<1x8xf32> to vector<16x8xf32>
    %70 = arith.addf %66, %69 : vector<16x8xf32>
    %71 = arith.truncf %70 : vector<16x8xf32> to vector<16x8xbf16>
    %c1_49 = arith.constant 1 : index
    %c0_50 = arith.constant 0 : index
    %c0_51 = arith.constant 0 : index
    %72 = vector.load %arg8[%c1_49, %c0_50, %c0_51] : memref<4x32x8xbf16, #tpu.memory_space<vmem>>, vector<1x32x8xbf16>
    %73 = vector.shape_cast %72 : vector<1x32x8xbf16> to vector<32x8xbf16>
    %cst_52 = arith.constant dense<0.000000e+00> : vector<16x8xf32>
    %74 = tpu.matmul %5, %73, %cst_52 {dimension_numbers = #tpu.dot_dimension_numbers<[1], [0], [0], [1], [0, 0, 1, 1], [], []>} : vector<16x32xbf16>, vector<32x8xbf16>, vector<16x8xf32> -> vector<16x8xf32>
    %c1_53 = arith.constant 1 : index
    %c0_54 = arith.constant 0 : index
    %c0_55 = arith.constant 0 : index
    %75 = vector.load %arg9[%c1_53, %c0_54, %c0_55] : memref<4x1x8xf32, #tpu.memory_space<vmem>>, vector<1x1x8xf32>
    %76 = vector.shape_cast %75 : vector<1x1x8xf32> to vector<1x8xf32>
    %77 = vector.broadcast %76 : vector<1x8xf32> to vector<16x8xf32>
    %78 = arith.addf %74, %77 : vector<16x8xf32>
    %79 = arith.truncf %78 : vector<16x8xf32> to vector<16x8xbf16>
    %cst_56 = arith.constant dense<0.000000e+00> : vector<16x16xf32>
    %80 = tpu.matmul %63, %71, %cst_56 {dimension_numbers = #tpu.dot_dimension_numbers<[1], [1], [0], [0], [0, 0, 1, 0], [], []>} : vector<16x8xbf16>, vector<16x8xbf16>, vector<16x16xf32> -> vector<16x16xf32>
    %81 = arith.addf %80, %11 : vector<16x16xf32>
    %cst_57 = arith.constant dense<0xFF800000> : vector<16xf32>
    %82 = vector.multi_reduction <maximumf>, %81, %cst_57 [1] : vector<16x16xf32> to vector<16xf32>
    %83 = vector.shape_cast %82 : vector<16xf32> to vector<16x1xf32>
    %84 = vector.broadcast %83 : vector<16x1xf32> to vector<16x16xf32>
    %85 = arith.subf %81, %84 : vector<16x16xf32>
    %86 = math.exp %85 : vector<16x16xf32>
    %cst_58 = arith.constant dense<0.000000e+00> : vector<16xf32>
    %87 = vector.multi_reduction <add>, %86, %cst_58 [1] : vector<16x16xf32> to vector<16xf32>
    %88 = vector.shape_cast %87 : vector<16xf32> to vector<16x1xf32>
    %89 = tpu.reciprocal %88 {approx = true} : vector<16x1xf32> -> vector<16x1xf32>
    %90 = vector.broadcast %89 : vector<16x1xf32> to vector<16x16xf32>
    %91 = arith.mulf %86, %90 : vector<16x16xf32>
    %92 = arith.truncf %91 : vector<16x16xf32> to vector<16x16xbf16>
    %cst_59 = arith.constant dense<0.000000e+00> : vector<16x8xf32>
    %93 = tpu.matmul %92, %79, %cst_59 {dimension_numbers = #tpu.dot_dimension_numbers<[1], [0], [0], [1], [0, 0, 1, 1], [], []>} : vector<16x16xbf16>, vector<16x8xbf16>, vector<16x8xf32> -> vector<16x8xf32>
    %94 = arith.truncf %93 : vector<16x8xf32> to vector<16x8xbf16>
    %c1_60 = arith.constant 1 : index
    %c0_61 = arith.constant 0 : index
    %c0_62 = arith.constant 0 : index
    %95 = vector.load %arg10[%c1_60, %c0_61, %c0_62] : memref<4x8x32xbf16, #tpu.memory_space<vmem>>, vector<1x8x32xbf16>
    %96 = vector.shape_cast %95 : vector<1x8x32xbf16> to vector<8x32xbf16>
    %cst_63 = arith.constant dense<0.000000e+00> : vector<16x32xf32>
    %97 = tpu.matmul %94, %96, %cst_63 {dimension_numbers = #tpu.dot_dimension_numbers<[1], [0], [0], [1], [0, 0, 1, 1], [], []>} : vector<16x8xbf16>, vector<8x32xbf16>, vector<16x32xf32> -> vector<16x32xf32>
    %98 = arith.addf %55, %97 : vector<16x32xf32>
    %c2 = arith.constant 2 : index
    %c0_64 = arith.constant 0 : index
    %c0_65 = arith.constant 0 : index
    %99 = vector.load %arg4[%c2, %c0_64, %c0_65] : memref<4x32x8xbf16, #tpu.memory_space<vmem>>, vector<1x32x8xbf16>
    %100 = vector.shape_cast %99 : vector<1x32x8xbf16> to vector<32x8xbf16>
    %cst_66 = arith.constant dense<0.000000e+00> : vector<16x8xf32>
    %101 = tpu.matmul %3, %100, %cst_66 {dimension_numbers = #tpu.dot_dimension_numbers<[1], [0], [0], [1], [0, 0, 1, 1], [], []>} : vector<16x32xbf16>, vector<32x8xbf16>, vector<16x8xf32> -> vector<16x8xf32>
    %c2_67 = arith.constant 2 : index
    %c0_68 = arith.constant 0 : index
    %c0_69 = arith.constant 0 : index
    %102 = vector.load %arg5[%c2_67, %c0_68, %c0_69] : memref<4x1x8xf32, #tpu.memory_space<vmem>>, vector<1x1x8xf32>
    %103 = vector.shape_cast %102 : vector<1x1x8xf32> to vector<1x8xf32>
    %104 = vector.broadcast %103 : vector<1x8xf32> to vector<16x8xf32>
    %105 = arith.addf %101, %104 : vector<16x8xf32>
    %106 = arith.truncf %105 : vector<16x8xf32> to vector<16x8xbf16>
    %c2_70 = arith.constant 2 : index
    %c0_71 = arith.constant 0 : index
    %c0_72 = arith.constant 0 : index
    %107 = vector.load %arg6[%c2_70, %c0_71, %c0_72] : memref<4x32x8xbf16, #tpu.memory_space<vmem>>, vector<1x32x8xbf16>
    %108 = vector.shape_cast %107 : vector<1x32x8xbf16> to vector<32x8xbf16>
    %cst_73 = arith.constant dense<0.000000e+00> : vector<16x8xf32>
    %109 = tpu.matmul %5, %108, %cst_73 {dimension_numbers = #tpu.dot_dimension_numbers<[1], [0], [0], [1], [0, 0, 1, 1], [], []>} : vector<16x32xbf16>, vector<32x8xbf16>, vector<16x8xf32> -> vector<16x8xf32>
    %c2_74 = arith.constant 2 : index
    %c0_75 = arith.constant 0 : index
    %c0_76 = arith.constant 0 : index
    %110 = vector.load %arg7[%c2_74, %c0_75, %c0_76] : memref<4x1x8xf32, #tpu.memory_space<vmem>>, vector<1x1x8xf32>
    %111 = vector.shape_cast %110 : vector<1x1x8xf32> to vector<1x8xf32>
    %112 = vector.broadcast %111 : vector<1x8xf32> to vector<16x8xf32>
    %113 = arith.addf %109, %112 : vector<16x8xf32>
    %114 = arith.truncf %113 : vector<16x8xf32> to vector<16x8xbf16>
    %c2_77 = arith.constant 2 : index
    %c0_78 = arith.constant 0 : index
    %c0_79 = arith.constant 0 : index
    %115 = vector.load %arg8[%c2_77, %c0_78, %c0_79] : memref<4x32x8xbf16, #tpu.memory_space<vmem>>, vector<1x32x8xbf16>
    %116 = vector.shape_cast %115 : vector<1x32x8xbf16> to vector<32x8xbf16>
    %cst_80 = arith.constant dense<0.000000e+00> : vector<16x8xf32>
    %117 = tpu.matmul %5, %116, %cst_80 {dimension_numbers = #tpu.dot_dimension_numbers<[1], [0], [0], [1], [0, 0, 1, 1], [], []>} : vector<16x32xbf16>, vector<32x8xbf16>, vector<16x8xf32> -> vector<16x8xf32>
    %c2_81 = arith.constant 2 : index
    %c0_82 = arith.constant 0 : index
    %c0_83 = arith.constant 0 : index
    %118 = vector.load %arg9[%c2_81, %c0_82, %c0_83] : memref<4x1x8xf32, #tpu.memory_space<vmem>>, vector<1x1x8xf32>
    %119 = vector.shape_cast %118 : vector<1x1x8xf32> to vector<1x8xf32>
    %120 = vector.broadcast %119 : vector<1x8xf32> to vector<16x8xf32>
    %121 = arith.addf %117, %120 : vector<16x8xf32>
    %122 = arith.truncf %121 : vector<16x8xf32> to vector<16x8xbf16>
    %cst_84 = arith.constant dense<0.000000e+00> : vector<16x16xf32>
    %123 = tpu.matmul %106, %114, %cst_84 {dimension_numbers = #tpu.dot_dimension_numbers<[1], [1], [0], [0], [0, 0, 1, 0], [], []>} : vector<16x8xbf16>, vector<16x8xbf16>, vector<16x16xf32> -> vector<16x16xf32>
    %124 = arith.addf %123, %11 : vector<16x16xf32>
    %cst_85 = arith.constant dense<0xFF800000> : vector<16xf32>
    %125 = vector.multi_reduction <maximumf>, %124, %cst_85 [1] : vector<16x16xf32> to vector<16xf32>
    %126 = vector.shape_cast %125 : vector<16xf32> to vector<16x1xf32>
    %127 = vector.broadcast %126 : vector<16x1xf32> to vector<16x16xf32>
    %128 = arith.subf %124, %127 : vector<16x16xf32>
    %129 = math.exp %128 : vector<16x16xf32>
    %cst_86 = arith.constant dense<0.000000e+00> : vector<16xf32>
    %130 = vector.multi_reduction <add>, %129, %cst_86 [1] : vector<16x16xf32> to vector<16xf32>
    %131 = vector.shape_cast %130 : vector<16xf32> to vector<16x1xf32>
    %132 = tpu.reciprocal %131 {approx = true} : vector<16x1xf32> -> vector<16x1xf32>
    %133 = vector.broadcast %132 : vector<16x1xf32> to vector<16x16xf32>
    %134 = arith.mulf %129, %133 : vector<16x16xf32>
    %135 = arith.truncf %134 : vector<16x16xf32> to vector<16x16xbf16>
    %cst_87 = arith.constant dense<0.000000e+00> : vector<16x8xf32>
    %136 = tpu.matmul %135, %122, %cst_87 {dimension_numbers = #tpu.dot_dimension_numbers<[1], [0], [0], [1], [0, 0, 1, 1], [], []>} : vector<16x16xbf16>, vector<16x8xbf16>, vector<16x8xf32> -> vector<16x8xf32>
    %137 = arith.truncf %136 : vector<16x8xf32> to vector<16x8xbf16>
    %c2_88 = arith.constant 2 : index
    %c0_89 = arith.constant 0 : index
    %c0_90 = arith.constant 0 : index
    %138 = vector.load %arg10[%c2_88, %c0_89, %c0_90] : memref<4x8x32xbf16, #tpu.memory_space<vmem>>, vector<1x8x32xbf16>
    %139 = vector.shape_cast %138 : vector<1x8x32xbf16> to vector<8x32xbf16>
    %cst_91 = arith.constant dense<0.000000e+00> : vector<16x32xf32>
    %140 = tpu.matmul %137, %139, %cst_91 {dimension_numbers = #tpu.dot_dimension_numbers<[1], [0], [0], [1], [0, 0, 1, 1], [], []>} : vector<16x8xbf16>, vector<8x32xbf16>, vector<16x32xf32> -> vector<16x32xf32>
    %141 = arith.addf %98, %140 : vector<16x32xf32>
    %c3 = arith.constant 3 : index
    %c0_92 = arith.constant 0 : index
    %c0_93 = arith.constant 0 : index
    %142 = vector.load %arg4[%c3, %c0_92, %c0_93] : memref<4x32x8xbf16, #tpu.memory_space<vmem>>, vector<1x32x8xbf16>
    %143 = vector.shape_cast %142 : vector<1x32x8xbf16> to vector<32x8xbf16>
    %cst_94 = arith.constant dense<0.000000e+00> : vector<16x8xf32>
    %144 = tpu.matmul %3, %143, %cst_94 {dimension_numbers = #tpu.dot_dimension_numbers<[1], [0], [0], [1], [0, 0, 1, 1], [], []>} : vector<16x32xbf16>, vector<32x8xbf16>, vector<16x8xf32> -> vector<16x8xf32>
    %c3_95 = arith.constant 3 : index
    %c0_96 = arith.constant 0 : index
    %c0_97 = arith.constant 0 : index
    %145 = vector.load %arg5[%c3_95, %c0_96, %c0_97] : memref<4x1x8xf32, #tpu.memory_space<vmem>>, vector<1x1x8xf32>
    %146 = vector.shape_cast %145 : vector<1x1x8xf32> to vector<1x8xf32>
    %147 = vector.broadcast %146 : vector<1x8xf32> to vector<16x8xf32>
    %148 = arith.addf %144, %147 : vector<16x8xf32>
    %149 = arith.truncf %148 : vector<16x8xf32> to vector<16x8xbf16>
    %c3_98 = arith.constant 3 : index
    %c0_99 = arith.constant 0 : index
    %c0_100 = arith.constant 0 : index
    %150 = vector.load %arg6[%c3_98, %c0_99, %c0_100] : memref<4x32x8xbf16, #tpu.memory_space<vmem>>, vector<1x32x8xbf16>
    %151 = vector.shape_cast %150 : vector<1x32x8xbf16> to vector<32x8xbf16>
    %cst_101 = arith.constant dense<0.000000e+00> : vector<16x8xf32>
    %152 = tpu.matmul %5, %151, %cst_101 {dimension_numbers = #tpu.dot_dimension_numbers<[1], [0], [0], [1], [0, 0, 1, 1], [], []>} : vector<16x32xbf16>, vector<32x8xbf16>, vector<16x8xf32> -> vector<16x8xf32>
    %c3_102 = arith.constant 3 : index
    %c0_103 = arith.constant 0 : index
    %c0_104 = arith.constant 0 : index
    %153 = vector.load %arg7[%c3_102, %c0_103, %c0_104] : memref<4x1x8xf32, #tpu.memory_space<vmem>>, vector<1x1x8xf32>
    %154 = vector.shape_cast %153 : vector<1x1x8xf32> to vector<1x8xf32>
    %155 = vector.broadcast %154 : vector<1x8xf32> to vector<16x8xf32>
    %156 = arith.addf %152, %155 : vector<16x8xf32>
    %157 = arith.truncf %156 : vector<16x8xf32> to vector<16x8xbf16>
    %c3_105 = arith.constant 3 : index
    %c0_106 = arith.constant 0 : index
    %c0_107 = arith.constant 0 : index
    %158 = vector.load %arg8[%c3_105, %c0_106, %c0_107] : memref<4x32x8xbf16, #tpu.memory_space<vmem>>, vector<1x32x8xbf16>
    %159 = vector.shape_cast %158 : vector<1x32x8xbf16> to vector<32x8xbf16>
    %cst_108 = arith.constant dense<0.000000e+00> : vector<16x8xf32>
    %160 = tpu.matmul %5, %159, %cst_108 {dimension_numbers = #tpu.dot_dimension_numbers<[1], [0], [0], [1], [0, 0, 1, 1], [], []>} : vector<16x32xbf16>, vector<32x8xbf16>, vector<16x8xf32> -> vector<16x8xf32>
    %c3_109 = arith.constant 3 : index
    %c0_110 = arith.constant 0 : index
    %c0_111 = arith.constant 0 : index
    %161 = vector.load %arg9[%c3_109, %c0_110, %c0_111] : memref<4x1x8xf32, #tpu.memory_space<vmem>>, vector<1x1x8xf32>
    %162 = vector.shape_cast %161 : vector<1x1x8xf32> to vector<1x8xf32>
    %163 = vector.broadcast %162 : vector<1x8xf32> to vector<16x8xf32>
    %164 = arith.addf %160, %163 : vector<16x8xf32>
    %165 = arith.truncf %164 : vector<16x8xf32> to vector<16x8xbf16>
    %cst_112 = arith.constant dense<0.000000e+00> : vector<16x16xf32>
    %166 = tpu.matmul %149, %157, %cst_112 {dimension_numbers = #tpu.dot_dimension_numbers<[1], [1], [0], [0], [0, 0, 1, 0], [], []>} : vector<16x8xbf16>, vector<16x8xbf16>, vector<16x16xf32> -> vector<16x16xf32>
    %167 = arith.addf %166, %11 : vector<16x16xf32>
    %cst_113 = arith.constant dense<0xFF800000> : vector<16xf32>
    %168 = vector.multi_reduction <maximumf>, %167, %cst_113 [1] : vector<16x16xf32> to vector<16xf32>
    %169 = vector.shape_cast %168 : vector<16xf32> to vector<16x1xf32>
    %170 = vector.broadcast %169 : vector<16x1xf32> to vector<16x16xf32>
    %171 = arith.subf %167, %170 : vector<16x16xf32>
    %172 = math.exp %171 : vector<16x16xf32>
    %cst_114 = arith.constant dense<0.000000e+00> : vector<16xf32>
    %173 = vector.multi_reduction <add>, %172, %cst_114 [1] : vector<16x16xf32> to vector<16xf32>
    %174 = vector.shape_cast %173 : vector<16xf32> to vector<16x1xf32>
    %175 = tpu.reciprocal %174 {approx = true} : vector<16x1xf32> -> vector<16x1xf32>
    %176 = vector.broadcast %175 : vector<16x1xf32> to vector<16x16xf32>
    %177 = arith.mulf %172, %176 : vector<16x16xf32>
    %178 = arith.truncf %177 : vector<16x16xf32> to vector<16x16xbf16>
    %cst_115 = arith.constant dense<0.000000e+00> : vector<16x8xf32>
    %179 = tpu.matmul %178, %165, %cst_115 {dimension_numbers = #tpu.dot_dimension_numbers<[1], [0], [0], [1], [0, 0, 1, 1], [], []>} : vector<16x16xbf16>, vector<16x8xbf16>, vector<16x8xf32> -> vector<16x8xf32>
    %180 = arith.truncf %179 : vector<16x8xf32> to vector<16x8xbf16>
    %c3_116 = arith.constant 3 : index
    %c0_117 = arith.constant 0 : index
    %c0_118 = arith.constant 0 : index
    %181 = vector.load %arg10[%c3_116, %c0_117, %c0_118] : memref<4x8x32xbf16, #tpu.memory_space<vmem>>, vector<1x8x32xbf16>
    %182 = vector.shape_cast %181 : vector<1x8x32xbf16> to vector<8x32xbf16>
    %cst_119 = arith.constant dense<0.000000e+00> : vector<16x32xf32>
    %183 = tpu.matmul %180, %182, %cst_119 {dimension_numbers = #tpu.dot_dimension_numbers<[1], [0], [0], [1], [0, 0, 1, 1], [], []>} : vector<16x8xbf16>, vector<8x32xbf16>, vector<16x32xf32> -> vector<16x32xf32>
    %184 = arith.addf %141, %183 : vector<16x32xf32>
    %c0_120 = arith.constant 0 : index
    %c0_121 = arith.constant 0 : index
    %185 = vector.load %arg11[%c0_120, %c0_121] : memref<1x32xf32, #tpu.memory_space<vmem>>, vector<1x32xf32>
    %186 = vector.broadcast %185 : vector<1x32xf32> to vector<16x32xf32>
    %187 = arith.addf %184, %186 : vector<16x32xf32>
    %188 = arith.extf %3 : vector<16x32xbf16> to vector<16x32xf32>
    %189 = arith.addf %187, %188 : vector<16x32xf32>
    %cst_122 = arith.constant dense<0.000000e+00> : vector<16xf32>
    %190 = vector.multi_reduction <add>, %189, %cst_122 [1] : vector<16x32xf32> to vector<16xf32>
    %191 = vector.shape_cast %190 : vector<16xf32> to vector<16x1xf32>
    %cst_123 = arith.constant 3.200000e+01 : f32
    %192 = vector.broadcast %cst_123 : f32 to vector<16x1xf32>
    %193 = arith.divf %191, %192 : vector<16x1xf32>
    %194 = vector.broadcast %193 : vector<16x1xf32> to vector<16x32xf32>
    %195 = arith.subf %189, %194 : vector<16x32xf32>
    %196 = arith.mulf %195, %195 : vector<16x32xf32>
    %cst_124 = arith.constant dense<0.000000e+00> : vector<16xf32>
    %197 = vector.multi_reduction <add>, %196, %cst_124 [1] : vector<16x32xf32> to vector<16xf32>
    %198 = vector.shape_cast %197 : vector<16xf32> to vector<16x1xf32>
    %cst_125 = arith.constant 3.200000e+01 : f32
    %199 = vector.broadcast %cst_125 : f32 to vector<16x1xf32>
    %200 = arith.divf %198, %199 : vector<16x1xf32>
    %cst_126 = arith.constant 9.99999997E-7 : f32
    %201 = vector.broadcast %cst_126 : f32 to vector<16x1xf32>
    %202 = arith.addf %200, %201 : vector<16x1xf32>
    %203 = math.rsqrt %202 : vector<16x1xf32>
    %204 = vector.broadcast %203 : vector<16x1xf32> to vector<16x32xf32>
    %205 = arith.mulf %195, %204 : vector<16x32xf32>
    %c0_127 = arith.constant 0 : index
    %c0_128 = arith.constant 0 : index
    %206 = vector.load %arg12[%c0_127, %c0_128] : memref<1x32xf32, #tpu.memory_space<vmem>>, vector<1x32xf32>
    %207 = vector.broadcast %206 : vector<1x32xf32> to vector<16x32xf32>
    %208 = arith.mulf %205, %207 : vector<16x32xf32>
    %c0_129 = arith.constant 0 : index
    %c0_130 = arith.constant 0 : index
    %209 = vector.load %arg13[%c0_129, %c0_130] : memref<1x32xf32, #tpu.memory_space<vmem>>, vector<1x32xf32>
    %210 = vector.broadcast %209 : vector<1x32xf32> to vector<16x32xf32>
    %211 = arith.addf %208, %210 : vector<16x32xf32>
    %212 = arith.truncf %211 : vector<16x32xf32> to vector<16x32xbf16>
    %c0_131 = arith.constant 0 : index
    %c0_132 = arith.constant 0 : index
    %c0_133 = arith.constant 0 : index
    %213 = vector.load %arg14[%c0_131, %c0_132, %c0_133] : memref<1x16x32xbf16, #tpu.memory_space<vmem>>, vector<1x16x32xbf16>
    %214 = vector.shape_cast %213 : vector<1x16x32xbf16> to vector<16x32xbf16>
    %215 = vector.shape_cast %212 : vector<16x32xbf16> to vector<1x16x32xbf16>
    tpu.vector_store %arg14[%c0_131, %c0_132, %c0_133], %215 {strides = array<i32>} : memref<1x16x32xbf16, #tpu.memory_space<vmem>>, vector<1x16x32xbf16>,
    return
  }
  func.func @transform_0(%arg0: i32, %arg1: memref<2xi32, #tpu.memory_space<smem>>) -> (i32, i32, i32) {
    %c0_i32 = arith.constant 0 : i32
    %c0_i32_0 = arith.constant 0 : i32
    %c0_i32_1 = arith.constant 0 : i32
    return %arg0, %c0_i32, %c0_i32_0 : i32, i32, i32
  }
  func.func @transform_1(%arg0: i32, %arg1: memref<2xi32, #tpu.memory_space<smem>>) -> (i32, i32, i32) {
    %c0_i32 = arith.constant 0 : i32
    %c0_i32_0 = arith.constant 0 : i32
    %c0_i32_1 = arith.constant 0 : i32
    return %arg0, %c0_i32, %c0_i32_0 : i32, i32, i32
  }
  func.func @transform_2(%arg0: i32, %arg1: memref<2xi32, #tpu.memory_space<smem>>) -> (i32, i32, i32) {
    %c0_i32 = arith.constant 0 : i32
    %c0_i32_0 = arith.constant 0 : i32
    %c0_i32_1 = arith.constant 0 : i32
    %c0_i32_2 = arith.constant 0 : i32
    return %c0_i32, %c0_i32_0, %c0_i32_1 : i32, i32, i32
  }
  func.func @transform_3(%arg0: i32, %arg1: memref<2xi32, #tpu.memory_space<smem>>) -> (i32, i32, i32) {
    %c0_i32 = arith.constant 0 : i32
    %c0_i32_0 = arith.constant 0 : i32
    %c0_i32_1 = arith.constant 0 : i32
    %c0_i32_2 = arith.constant 0 : i32
    return %c0_i32, %c0_i32_0, %c0_i32_1 : i32, i32, i32
  }
  func.func @transform_4(%arg0: i32, %arg1: memref<2xi32, #tpu.memory_space<smem>>) -> (i32, i32, i32) {
    %c0_i32 = arith.constant 0 : i32
    %c0_i32_0 = arith.constant 0 : i32
    %c0_i32_1 = arith.constant 0 : i32
    %c0_i32_2 = arith.constant 0 : i32
    return %c0_i32, %c0_i32_0, %c0_i32_1 : i32, i32, i32
  }
  func.func @transform_5(%arg0: i32, %arg1: memref<2xi32, #tpu.memory_space<smem>>) -> (i32, i32, i32) {
    %c0_i32 = arith.constant 0 : i32
    %c0_i32_0 = arith.constant 0 : i32
    %c0_i32_1 = arith.constant 0 : i32
    %c0_i32_2 = arith.constant 0 : i32
    return %c0_i32, %c0_i32_0, %c0_i32_1 : i32, i32, i32
  }
  func.func @transform_6(%arg0: i32, %arg1: memref<2xi32, #tpu.memory_space<smem>>) -> (i32, i32, i32) {
    %c0_i32 = arith.constant 0 : i32
    %c0_i32_0 = arith.constant 0 : i32
    %c0_i32_1 = arith.constant 0 : i32
    %c0_i32_2 = arith.constant 0 : i32
    return %c0_i32, %c0_i32_0, %c0_i32_1 : i32, i32, i32
  }
  func.func @transform_7(%arg0: i32, %arg1: memref<2xi32, #tpu.memory_space<smem>>) -> (i32, i32, i32) {
    %c0_i32 = arith.constant 0 : i32
    %c0_i32_0 = arith.constant 0 : i32
    %c0_i32_1 = arith.constant 0 : i32
    %c0_i32_2 = arith.constant 0 : i32
    return %c0_i32, %c0_i32_0, %c0_i32_1 : i32, i32, i32
  }
  func.func @transform_8(%arg0: i32, %arg1: memref<2xi32, #tpu.memory_space<smem>>) -> (i32, i32, i32) {
    %c0_i32 = arith.constant 0 : i32
    %c0_i32_0 = arith.constant 0 : i32
    %c0_i32_1 = arith.constant 0 : i32
    %c0_i32_2 = arith.constant 0 : i32
    return %c0_i32, %c0_i32_0, %c0_i32_1 : i32, i32, i32
  }
  func.func @transform_9(%arg0: i32, %arg1: memref<2xi32, #tpu.memory_space<smem>>) -> (i32, i32) {
    %c0_i32 = arith.constant 0 : i32
    %c0_i32_0 = arith.constant 0 : i32
    %c0_i32_1 = arith.constant 0 : i32
    return %c0_i32, %c0_i32_0 : i32, i32
  }
  func.func @transform_10(%arg0: i32, %arg1: memref<2xi32, #tpu.memory_space<smem>>) -> (i32, i32) {
    %c0_i32 = arith.constant 0 : i32
    %c0_i32_0 = arith.constant 0 : i32
    %c0_i32_1 = arith.constant 0 : i32
    return %c0_i32, %c0_i32_0 : i32, i32
  }
  func.func @transform_11(%arg0: i32, %arg1: memref<2xi32, #tpu.memory_space<smem>>) -> (i32, i32) {
    %c0_i32 = arith.constant 0 : i32
    %c0_i32_0 = arith.constant 0 : i32
    %c0_i32_1 = arith.constant 0 : i32
    return %c0_i32, %c0_i32_0 : i32, i32
  }
  func.func @transform_12(%arg0: i32, %arg1: memref<2xi32, #tpu.memory_space<smem>>) -> (i32, i32, i32) {
    %c0_i32 = arith.constant 0 : i32
    %c0_i32_0 = arith.constant 0 : i32
    %c0_i32_1 = arith.constant 0 : i32
    return %arg0, %c0_i32, %c0_i32_0 : i32, i32, i32
  }
}

</mosaic_0001>

<bundles_post_ra>
// kernel: tpu_custom_call.1
= control target key start
LH: loop header
LB: loop body
LE: loop exit
PB: predicated region body
PF: predicated region fallthrough
CT: control target
= control target key end

     0   :  { %s3132_s0 = inlined_call_operand.vmem [shape: s32[2], index: 0, kind: input, shape index: {}]   ;;  %s3133_s1 = inlined_call_operand.vmem [shape: bf16[2,16,32], index: 1, kind: input, shape index: {}]   ;;  %s3134_s2 = inlined_call_operand.vmem [shape: bf16[2,16,32], index: 2, kind: input, shape index: {}]   ;;  %s3135_s3 = inlined_call_operand.vmem [shape: bf16[4,32,8], index: 3, kind: input, shape index: {}]   ;;  %s3136_s4 = inlined_call_operand.vmem [shape: f32[4,1,8], index: 4, kind: input, shape index: {}]   ;;  %s3137_s5 = inlined_call_operand.vmem [shape: bf16[4,32,8], index: 5, kind: input, shape index: {}]   ;;  %s3138_s6 = inlined_call_operand.vmem [shape: f32[4,1,8], index: 6, kind: input, shape index: {}]   ;;  %s3139_s7 = inlined_call_operand.vmem [shape: bf16[4,32,8], index: 7, kind: input, shape index: {}]   ;;  %s3140_s8 = inlined_call_operand.vmem [shape: f32[4,1,8], index: 8, kind: input, shape index: {}]   ;;  %s3141_s9 = inlined_call_operand.vmem [shape: bf16[4,8,32], index: 9, kind: input, shape index: {}]   ;;  %s3142_s10 = inlined_call_operand.vmem [shape: f32[1,32], index: 10, kind: input, shape index: {}]   ;;  %s3143_s11 = inlined_call_operand.vmem [shape: f32[1,32], index: 11, kind: input, shape index: {}]   ;;  %s3144_s12 = inlined_call_operand.vmem [shape: f32[1,32], index: 12, kind: input, shape index: {}]   ;;  %s3145_s13 = inlined_call_operand.hbm [shape: bf16[2,16,32], index: 13, kind: output, shape index: {}]  }
   0x1   :  { %s18_s27 = sshll.u32 %s3132_s0, 4  ;;  %s19_s27 = int_to_ptr.vmem [resolvable:$true] %s18_s27 }
   0x2   :  { %s2553_s28 = scalar_lea.vmem %s19_s27, 16  ;;  %p2558_p1 = scmp.lt.s32.totalorder %s19_s27, %s19_s27 }
   0x3   :  { %p2554_p0 = scmp.ne.s32.totalorder %s19_s27, %s2553_s28  ;;  %p2559_p2 = scmp.lt.s32.totalorder %s2553_s28, %s2553_s28 }
   0x5   :  { %p2560_p3 = por %p2559_p2, %p2558_p1 }
   0x7   :  { %p2561_p4 = pnand %p2560_p3, %p2554_p0 }
   0x9   :  { %2564 = shalt.err (!%p2561_p4)  }
   0xa   :  { %s2631_s29 = smov [#allocation3]  }
   0xb   :  { %21 = dma.vmem_to_smem %s19_s27, 16, %s2631_s29, [#allocation2] }
   0xc   :  { %2609 = dma.done.wait [#allocation2], 16 }
   0xd   :  { %2610 = vsyncadd [#allocation2], 4294967280 }
   0xe   :  { %23 = sfence }
   0xf   :  { %24 = vsyncpa [#allocation5], 0 }
  0x10   :  { %26 = vsyncpa [#allocation5 + $0x1], 0  ;;  %s2710_s30 = smov 0   ;;  %s2712_s14 = smov 0  }
  0x11   :  { %s2714_s0 = smov 0   ;;  %s2716_s15 = smov 0  }
  0x12 LB: > { %s2731_s16 = sadd.s32 4294967295, %s2629_s15   ;;  %s2084_s17 = sadd.s32 4294967294, %s2629_s15   ;;  %s2629_s15 = sphi %s2716_s15, %s3153_s15   ;;  %s2625_s0 = sphi %s2714_s0, %s3152_s0   ;;  %s2621_s14 = sphi %s2712_s14, %s3151_s14   ;;  %s2617_s30 = sphi %s2710_s30, %s3150_s30  }
  0x13   : > { %s2735_s18 = sadd.s32 1, %s2629_s15   ;;  %s301_s19 = sadd.s32 1, %s2625_s0 }
  0x14   : > { %s298_s20 = ssub.s32 %s2629_s15, %s2735_s18  ;;  %p311_p5 = scmp.ne.s32.totalorder %s2625_s0, %s2621_s14 }
  0x15   : > { %p299_p6 = scmp.eq.s32.totalorder %s298_s20, 0  ;;  %p312_p7 = scmp.eq.s32.totalorder %s2731_s16, 1 }
  0x16   : > { %p317_p8 = scmp.ne.s32.totalorder %s2621_s14, %s2617_s30  ;;  %p318_p9 = scmp.eq.s32.totalorder %s2084_s17, 1 }
  0x17   : > { %s2746_s21 = scalar_select %p299_p6, %s2625_s0, %s301_s19  }
  0x18   : > { %p2748_p10 = por %p312_p7, %p311_p5  ;;  %p2752_p11 = por %p318_p9, %p317_p8 }
  0x19   : > { %3146 = sst [smem:[#allocation8_spill]] %s2746_s21  ;;  %p2087_p12 = scmp.ge.s32.totalorder %s2629_s15, 1 }
  0x1a   : > { %p382_p13 = scmp.lt.s32.totalorder %s2629_s15, 3 }
  0x1c   : > { %p383_p0 = pnand %p2087_p12, %p382_p13 }
  0x1d   : > { %v2490_v0 = vld [vmem:[%s3137_s5] sm:$0xff] (!%p383_p0)   ;;  %v2632_v1 = vmov (!%p383_p0), 0.0   ;;  %v2491_v2 = vld [vmem:[%s3137_s5 + $0x8] sm:$0xff] (!%p383_p0)   ;;  %vm2633_vm0 = vmmov (!%p383_p0), 0   ;;  %p429_p1 = scmp.lt.s32.totalorder (!%p383_p0), %s2731_s16, 1  ;;  %vm478_vm1 = vcmask (!%p383_p0), 261120   ;;  %v445_v26 = vlaneseq (!%p383_p0) }
  0x1e   : > { %386 = sbr.rel (%p383_p0) target bundleno = 4290 (0x10c2), region = 68  ;;  %2286 = vmatprep.subr.bf16.mxu1 (!%p383_p0), %v2632_v1  ;;  %2278 = vmatprep.subr.bf16.mxu0 (!%p383_p0), %v2632_v1  ;;  %v2492_v3 = vld [vmem:[%s3135_s3] sm:$0xff] (!%p383_p0)   ;;  %v2494_v4 = vld [vmem:[%s3135_s3 + $0x8] sm:$0xff] (!%p383_p0)   ;;  %vm662_vm2 = vcmask (!%p383_p0), 64512   ;;  %s440_s28 = sld [smem:[#allocation3 + %s2731_s16]] (!%p383_p0)  ;;  %vm710_vm4 = vcmask (!%p383_p0), 130048  }
  0x1f   : > { %2287 = vmatpush3.bf16.msra.mxu1 (!%p383_p0), %v2490_v0  ;;  %2290 = vmatprep.mubr.msk.bf16.mxu1 (!%p383_p0), %vm2633_vm0, %v2632_v1  ;;  %v2098_v7 = vld [vmem:[%s3138_s6] ss:$0 sm:$0xff] (!%p383_p0)  ;;  %v2497_v25 = vld [vmem:[%s3139_s7 + $0x8] sm:$0xff] (!%p383_p0)   ;;  %v446_v27 = vand.u32 (!%p383_p0), 127, %v445_v26  ;;  %v2500_v56 = vld [vmem:[%s3135_s3 + $0x10] sm:$0xff] (!%p383_p0)   ;;  %vm1101_vm5 = vcmask (!%p383_p0), 1043456  }
  0x20   : > { %2288 = vmatprep.subr.bf16.mxu1 (!%p383_p0), %v2632_v1  ;;  %2282 = vmatprep.mubr.msk.bf16.mxu0 (!%p383_p0), %vm2633_vm0, %v2632_v1  ;;  %v2093_v9 = vld [vmem:[%s3136_s4] ss:$0 sm:$0xff] (!%p383_p0)  ;;  %v2501_v57 = vld [vmem:[%s3135_s3 + $0x18] sm:$0xff] (!%p383_p0)   ;;  %v2498_v0 = vld [vmem:[%s3137_s5 + $0x10] sm:$0xff] (!%p383_p0)   ;;  %s426_s25 = sand.u32 (!%p383_p0), 1, %s2621_s14   ;;  %s2217_s19 = sshll.u32 (!%p383_p0), %s2731_s16, 7 }
  0x21   : > { %2279 = vmatpush3.bf16.msra.mxu0 (!%p383_p0), %v2492_v3  ;;  %v2496_v24 = vld [vmem:[%s3139_s7] sm:$0xff] (!%p383_p0)   ;;  %v2499_v3 = vld [vmem:[%s3137_s5 + $0x18] sm:$0xff] (!%p383_p0)   ;;  %s2088_s26 = sshll.u32 (!%p383_p0), %s426_s25, 3  ;;  %vm1993_vm6 = vcmask (!%p383_p0), 257024   ;;  %s3091_s29 = scalar_lea.sflag (!%p383_p0), [#allocation5], %s426_s25 }
  0x22   : > { %2280 = vmatprep.subr.bf16.mxu0 (!%p383_p0), %v2632_v1  ;;  %v2103_v51 = vld [vmem:[%s3140_s8] ss:$0 sm:$0xff] (!%p383_p0) }
  0x23   : > { %2289 = vmatpush3.bf16.msra.mxu1 (!%p383_p0), %v2491_v2 }
  0x24   : > { %2302 = vmatprep.subr.bf16.mxu1 (!%p383_p0), %v2632_v1  ;;  %v447_v28 = vstv (!%p383_p0), %s440_s28  ;;  %s3087_s28 = scalar_lea.hbm (!%p383_p0), %s3145_s13, %s2217_s19 }
  0x25   : > { %s430_s17 = scalar_select %p429_p1, %s2731_s16, 1  ;;  %2281 = vmatpush3.bf16.msra.mxu0 %v2494_v4  ;;  %vm448_vm3 = vcmp.ge.s32.totalorder %v446_v27, %v447_v28  ;;  %v2114_v4 = vld [vmem:[%s3136_s4 + $0x1] ss:$0 sm:$0xff]  ;;  %v2502_v28 = vld [vmem:[%s3139_s7 + $0x10] sm:$0xff]  }
  0x26   : > { %2294 = vmatprep.subr.bf16.mxu0 %v2632_v1  ;;  %v2825_v29 = vsel %vm448_vm3, -1e+09, %v2632_v1 }
  0x27   : > { %s2213_s24 = sshll.u32 %s430_s17, 3 }
  0x28   : > { %s438_s27 = scalar_lea.vmem %s3134_s2, %s2213_s24  ;;  %s433_s21 = scalar_lea.vmem %s3133_s1, %s2213_s24 }
  0x29   : > { %v2787_v5 = vld [vmem:[%s438_s27] sm:$0xff]  }
  0x2a   : > { %v2789_v6 = vld [vmem:[%s433_s21] sm:$0xff]   ;;  %2291 = vmatmul.mubr.msk.bf16.vlgmr.msra.gmra.mrb[0].mxu1 %vm478_vm1, %v2787_v5  ;;  %s428_s21 = scalar_lea.vmem [#allocation4], %s2088_s26  ;;  %s2634_s26 = smov [#allocation4]  }
  0x2b   : > { %2304 = vmatprep.mubr.msk.bf16.mxu1 %vm2633_vm0, %v2632_v1  ;;  %2283 = vmatmul.mubr.msk.bf16.vlgmr.msra.gmra.mrb[0].mxu0 %vm478_vm1, %v2789_v6  ;;  %s2010_s20 = sshll.u32 %s428_s21, 4  ;;  %s2569_s17 = sshll.u32 %s2634_s26, 4  ;;  %s3089_s20 = int_to_ptr.vmem [resolvable:$true] %s2010_s20  ;;  %s2570_s17 = int_to_ptr.vmem [resolvable:$false] %s2569_s17 }
  0x2c   : > { %2298 = vmatprep.mubr.msk.bf16.mxu0 %vm2633_vm0, %v2632_v1  ;;  %2295 = vmatpush3.bf16.msra.mxu0 %v2496_v24  ;;  %s2565_s16 = scalar_lea.vmem %s3089_s20, 128  ;;  %s2571_s19 = scalar_lea.vmem %s2570_s17, 256 }
  0x2d   : > { %2296 = vmatprep.subr.bf16.mxu0 %v2632_v1  ;;  %p2566_p2 = scmp.ne.s32.totalorder %s3089_s20, %s2565_s16  ;;  %p2572_p5 = scmp.lt.s32.totalorder %s3089_s20, %s2570_s17 }
  0x2e   : > { %p2573_p6 = scmp.lt.s32.totalorder %s2571_s19, %s2565_s16 }
  0x2f   : > { %p2567_p3 = pnand %p2566_p2, %p2748_p10 }
  0x30   : > { %2297 = vmatpush3.bf16.msra.mxu0 %v2497_v25  ;;  %p2574_p7 = por %p2573_p6, %p2572_p5 }
  0x31   : > { %2308 = vmatprep.subr.bf16.mxu0 %v2632_v1  ;;  %p2568_p4 = pneg %p2567_p3 }
  0x33   : > { %2299 = vmatmul.mubr.msk.bf16.vlgmr.msra.gmra.mrb[4].mxu0 %vm478_vm1, %v2787_v5  ;;  %p2575_p8 = pnand %p2574_p7, %p2568_p4 }
  0x34   : > { %2310 = vmatprep.mubr.msk.bf16.mxu0 %vm2633_vm0, %v2632_v1 }
  0xfd   : > { %v589_v8 = vpop.f32.mrb[0].mxu1 }
  0xfe   : > { %v2292_v10 = vpop.f32.mrb[1].mxu1  ;;  %v516_v12 = vpop.f32.mrb[0].mxu0  ;;  %v590_v13 = vadd.f32 %v2098_v7, %v589_v8 }
  0xff   : > { %v592_v11 = vpop.f32.mrb[2].mxu1  ;;  %v517_v16 = vadd.f32 %v2093_v9, %v516_v12  ;;  %v2284_v17 = vpop.f32.mrb[1].mxu0 }
 0x100   : > { %v593_v14 = vadd.f32 %v2098_v7, %v592_v11  ;;  %v2293_v15 = vpop.f32.mrb[3].mxu1  ;;  %v519_v18 = vpop.f32.mrb[2].mxu0 }
 0x101   : > { %v520_v20 = vadd.f32 %v2093_v9, %v519_v18  ;;  %v2285_v21 = vpop.f32.mrb[3].mxu0 }
 0x102   : > { %v596_v19 = vpack.c.bf16 %v593_v14, %v590_v13 }
 0x103   : > { %v523_v22 = vpack.c.bf16 %v520_v20, %v517_v16 }
 0x104   : > { %v667_v23 = vsel %vm662_vm2, %v596_v19, 0  ;;  %v2123_v19 = vld [vmem:[%s3138_s6 + $0x1] ss:$0 sm:$0xff] }
 0x105   : > { %2303 = vmatpush3.bf16.xpose.msra.mxu1 %v667_v23 }
 0x106   : > { %2314 = vmatprep.subr.bf16.mxu1 %v2632_v1  ;;  %v654_v48 = vpop.f32.mrb[4].mxu0 }
 0x107   : > { %v2300_v49 = vpop.f32.mrb[5].mxu0  ;;  %v655_v53 = vadd.f32 %v2103_v51, %v654_v48 }
 0x108   : > { %v657_v50 = vpop.f32.mrb[6].mxu0 }
 0x109   : > { %v2301_v52 = vpop.f32.mrb[7].mxu0  ;;  %v658_v54 = vadd.f32 %v2103_v51, %v657_v50 }
 0x10a   : > { %v2132_v52 = vld [vmem:[%s3140_s8 + $0x1] ss:$0 sm:$0xff] }
 0x10b   : > { %v661_v55 = vpack.c.bf16 %v658_v54, %v655_v53 }
 0x10c   : > { %2305 = vmatmul.mubr.msk.bf16.vlgmr.msra.gmra.mrb[4].mxu1 %vm662_vm2, %v523_v22 }
 0x10d   : > { %2318 = vmatprep.mubr.msk.bf16.mxu1 %vm2633_vm0, %v2632_v1  ;;  %2309 = vmatpush3.bf16.msra.mxu0 %v661_v55 }
 0x10e   : > { %2322 = vmatprep.subr.bf16.mxu0 %v2632_v1  ;;  %2315 = vmatpush3.bf16.msra.mxu1 %v2500_v56 }
 0x10f   : > { %2316 = vmatprep.subr.bf16.mxu1 %v2632_v1 }
 0x112   : > { %2317 = vmatpush3.bf16.msra.mxu1 %v2501_v57  ;;  %v2138_v57 = vld [vmem:[%s3141_s9 + $0x4] sm:$0xf] }
 0x113   : > { %2330 = vmatprep.subr.bf16.mxu1 %v2632_v1 }
 0x115   : > { %2319 = vmatmul.mubr.msk.bf16.vlgmr.msra.gmra.mrb[8].mxu1 %vm478_vm1, %v2789_v6 }
 0x116   : > { %2334 = vmatprep.mubr.msk.bf16.mxu1 %vm2633_vm0, %v2632_v1  ;;  %2331 = vmatpush3.bf16.msra.mxu1 %v2502_v28 }
 0x117   : > { %2332 = vmatprep.subr.bf16.mxu1 %v2632_v1 }
 0x1df   : > { %v703_v30 = vpop.f32.mrb[4].mxu1 }
 0x1e0   : > { %v704_v31 = vadd.f32 %v703_v30, %v2825_v29  ;;  %v2306_v32 = vpop.f32.mrb[5].mxu1  ;;  %v2503_v30 = vld [vmem:[%s3139_s7 + $0x18] sm:$0xff]  }
 0x1e1   : > { %v706_v33 = vpop.f32.mrb[6].mxu1  ;;  %2333 = vmatpush3.bf16.msra.mxu1 %v2503_v30 }
 0x1e2   : > { %v707_v34 = vadd.f32 %v706_v33, %v2825_v29  ;;  %v2307_v35 = vpop.f32.mrb[7].mxu1  ;;  %v711_v36 = vsel %vm710_vm4, %v704_v31, -inf  ;;  %2344 = vmatprep.subr.bf16.mxu1 %v2632_v1 }
 0x1e3   : > { %712 = vmax.xlane.f32.xlu0 %v711_v36 }
 0x1e4   : > { %v714_v37 = vsel %vm710_vm4, %v707_v34, -inf  ;;  %2335 = vmatmul.mubr.msk.bf16.vlgmr.msra.gmra.mrb[12].mxu1 %vm478_vm1, %v2787_v5 }
 0x1e5   : > { %2346 = vmatprep.mubr.msk.bf16.mxu1 %vm2633_vm0, %v2632_v1 }
 0x1e7   : > { %715 = vmax.xlane.f32.xlu0 %v714_v37 }
 0x1e8   : > { %v839_v7 = vpop.f32.mrb[8].mxu1 }
 0x1e9   : > { %v840_v8 = vadd.f32 %v2114_v4, %v839_v7  ;;  %v2320_v9 = vpop.f32.mrb[9].mxu1  ;;  %v2504_v7 = vld [vmem:[%s3137_s5 + $0x20] sm:$0xff]  }
 0x1ea   : > { %v842_v10 = vpop.f32.mrb[10].mxu1 }
 0x1eb   : > { %v843_v11 = vadd.f32 %v2114_v4, %v842_v10  ;;  %v2321_v12 = vpop.f32.mrb[11].mxu1 }
 0x1ec   : > { %v2506_v12 = vld [vmem:[%s3135_s3 + $0x20] sm:$0xff]  }
 0x1ed   : > { %v846_v13 = vpack.c.bf16 %v843_v11, %v840_v8  ;;  %v2505_v8 = vld [vmem:[%s3137_s5 + $0x28] sm:$0xff]  }
 0x270   : > { %v713_v38 = vpop.xlane.xlu0 %712 }
 0x271   : > { %v717_v39 = vsub.f32 %v704_v31, %v713_v38 }
 0x273   : > { %v719_v40 = vmul.f32 1.442695, %v717_v39 }
 0x274   : > { %v716_v41 = vpop.xlane.xlu0 %715 }
 0x275   : > { %2517 = vpow2.f32 %v719_v40  ;;  %v718_v42 = vsub.f32 %v707_v34, %v716_v41 }
 0x277   : > { %v721_v43 = vmul.f32 1.442695, %v718_v42 }
 0x279   : > { %2519 = vpow2.f32 %v721_v43 }
 0x27f   : > { %v2518_v44 = vpop.eup %2517 }
 0x280   : > { %v723_v45 = vsel %vm710_vm4, %v2518_v44, 0.0 }
 0x281   : > { %724 = vadd.xlane.f32.xlu1 %v723_v45 }
 0x283   : > { %v2520_v46 = vpop.eup %2519 }
 0x284   : > { %v726_v47 = vsel %vm710_vm4, %v2520_v46, 0.0 }
 0x285   : > { %727 = vadd.xlane.f32.xlu1 %v726_v47 }
 0x2b7   : > { %v973_v49 = vpop.f32.mrb[12].mxu1 }
 0x2b8   : > { %v2336_v50 = vpop.f32.mrb[13].mxu1  ;;  %v974_v54 = vadd.f32 %v2132_v52, %v973_v49 }
 0x2b9   : > { %v976_v51 = vpop.f32.mrb[14].mxu1 }
 0x2ba   : > { %v2337_v53 = vpop.f32.mrb[15].mxu1  ;;  %v977_v55 = vadd.f32 %v2132_v52, %v976_v51 }
 0x2bc   : > { %v980_v56 = vpack.c.bf16 %v977_v55, %v974_v54 }
 0x2be   : > { %2345 = vmatpush3.bf16.msra.mxu1 %v980_v56 }
 0x2bf   : > { %2356 = vmatprep.subr.bf16.mxu1 %v2632_v1 }
 0x30e   : > { %v725_v58 = vpop.xlane.xlu1 %724 }
 0x30f   : > { %2521 = vrcp.f32 %v725_v58  ;;  %v1103_v58 = vsel %vm1101_vm5, %v2138_v57, 0 }
 0x312   : > { %v728_v59 = vpop.xlane.xlu1 %727 }
 0x313   : > { %2523 = vrcp.f32 %v728_v59 }
 0x319   : > { %v2522_v60 = vpop.eup %2521 }
 0x31a   : > { %v731_v62 = vmul.f32 %v2522_v60, %v2518_v44 }
 0x31d   : > { %v2524_v61 = vpop.eup %2523 }
 0x31e   : > { %v732_v63 = vmul.f32 %v2524_v61, %v2520_v46 }
 0x320   : > { %v733_v2 = vpack.c.bf16 %v732_v63, %v731_v62  ;;  %v779_v63 = vld [vmem:[%s3141_s9] sm:$0xf] }
 0x321   : > { %v1150_v4 = vsel %vm1101_vm5, %v779_v63, 0 }
 0x322   : > { %2311 = vmatmul.mubr.msk.bf16.vlgmr.msra.gmra.mrb[8].mxu0 %vm710_vm4, %v733_v2 }
 0x323   : > { %2323 = vmatpush3.bf16.msra.mxu0 %v2498_v0  ;;  %2326 = vmatprep.mubr.msk.bf16.mxu0 %vm2633_vm0, %v2632_v1 }
 0x324   : > { %2324 = vmatprep.subr.bf16.mxu0 %v2632_v1 }
 0x327   : > { %2325 = vmatpush3.bf16.msra.mxu0 %v2499_v3 }
 0x328   : > { %2338 = vmatprep.subr.bf16.mxu0 %v2632_v1 }
 0x32a   : > { %2327 = vmatmul.mubr.msk.bf16.vlgmr.msra.gmra.mrb[12].mxu0 %vm478_vm1, %v2787_v5 }
 0x32b   : > { %2340 = vmatprep.mubr.msk.bf16.mxu0 %vm2633_vm0, %v2632_v1 }
 0x3f5   : > { %v2867_v14 = vpop.f32.mrb[8].mxu0 }
 0x3f6   : > { %v2312_v15 = vpop.f32.mrb[9].mxu0 }
 0x3f7   : > { %v2869_v16 = vpop.f32.mrb[10].mxu0  ;;  %v2507_v15 = vld [vmem:[%s3135_s3 + $0x28] sm:$0xff]  }
 0x3f8   : > { %v778_v17 = vpack.c.bf16 %v2869_v16, %v2867_v14  ;;  %v2313_v18 = vpop.f32.mrb[11].mxu0 }
 0x3fd   : > { %v906_v20 = vpop.f32.mrb[12].mxu0 }
 0x3fe   : > { %v2328_v21 = vpop.f32.mrb[13].mxu0  ;;  %v907_v23 = vadd.f32 %v2123_v19, %v906_v20  ;;  %v2155_v20 = vld [vmem:[%s3138_s6 + $0x2] ss:$0 sm:$0xff] }
 0x3ff   : > { %v909_v22 = vpop.f32.mrb[14].mxu0 }
 0x400   : > { %v910_v24 = vadd.f32 %v2123_v19, %v909_v22  ;;  %v2329_v25 = vpop.f32.mrb[15].mxu0 }
 0x402   : > { %v913_v26 = vpack.c.bf16 %v910_v24, %v907_v23 }
 0x404   : > { %v985_v27 = vsel %vm662_vm2, %v913_v26, 0 }
 0x405   : > { %2339 = vmatpush3.bf16.xpose.msra.mxu0 %v985_v27 }
 0x406   : > { %2350 = vmatprep.subr.bf16.mxu0 %v2632_v1 }
 0x40c   : > { %2341 = vmatmul.mubr.msk.bf16.vlgmr.msra.gmra.mrb[16].mxu0 %vm662_vm2, %v846_v13 }
 0x40d   : > { %2352 = vmatprep.mubr.msk.bf16.mxu0 %vm2633_vm0, %v2632_v1  ;;  %2351 = vmatpush3.bf16.msra.mxu0 %v1103_v58 }
 0x40e   : > { %2362 = vmatprep.subr.bf16.mxu0 %v2632_v1 }
 0x4df   : > { %v1021_v31 = vpop.f32.mrb[16].mxu0 }
 0x4e0   : > { %v1022_v32 = vadd.f32 %v1021_v31, %v2825_v29  ;;  %v2342_v33 = vpop.f32.mrb[17].mxu0 }
 0x4e1   : > { %v1024_v34 = vpop.f32.mrb[18].mxu0 }
 0x4e2   : > { %v1025_v35 = vadd.f32 %v1024_v34, %v2825_v29  ;;  %v2343_v36 = vpop.f32.mrb[19].mxu0  ;;  %v1028_v37 = vsel %vm710_vm4, %v1022_v32, -inf }
 0x4e3   : > { %1029 = vmax.xlane.f32.xlu0 %v1028_v37  ;;  %v2146_v36 = vld [vmem:[%s3136_s4 + $0x2] ss:$0 sm:$0xff] }
 0x4e4   : > { %v1031_v38 = vsel %vm710_vm4, %v1025_v35, -inf }
 0x4e5   : > { %1032 = vmax.xlane.f32.xlu1 %v1031_v38 }
 0x570   : > { %v1030_v39 = vpop.xlane.xlu0 %1029 }
 0x571   : > { %v1034_v40 = vsub.f32 %v1022_v32, %v1030_v39 }
 0x572   : > { %v1033_v41 = vpop.xlane.xlu1 %1032 }
 0x573   : > { %v1036_v42 = vmul.f32 1.442695, %v1034_v40  ;;  %v1035_v43 = vsub.f32 %v1025_v35, %v1033_v41 }
 0x575   : > { %2525 = vpow2.f32 %v1036_v42  ;;  %v1038_v44 = vmul.f32 1.442695, %v1035_v43 }
 0x577   : > { %2527 = vpow2.f32 %v1038_v44  ;;  %v2508_v44 = vld [vmem:[%s3139_s7 + $0x20] sm:$0xff]  }
 0x57f   : > { %v2526_v45 = vpop.eup %2525 }
 0x580   : > { %v1040_v46 = vsel %vm710_vm4, %v2526_v45, 0.0 }
 0x581   : > { %v2528_v47 = vpop.eup %2527  ;;  %1041 = vadd.xlane.f32.xlu0 %v1040_v46 }
 0x582   : > { %v1043_v48 = vsel %vm710_vm4, %v2528_v47, 0.0 }
 0x583   : > { %1044 = vadd.xlane.f32.xlu1 %v1043_v48 }
 0x60e   : > { %v1042_v59 = vpop.xlane.xlu0 %1041 }
 0x60f   : > { %2529 = vrcp.f32 %v1042_v59 }
 0x610   : > { %v1045_v60 = vpop.xlane.xlu1 %1044 }
 0x611   : > { %2531 = vrcp.f32 %v1045_v60 }
 0x619   : > { %v2530_v61 = vpop.eup %2529 }
 0x61a   : > { %v1048_v0 = vmul.f32 %v2530_v61, %v2526_v45  ;;  %v2509_v45 = vld [vmem:[%s3139_s7 + $0x28] sm:$0xff]  }
 0x61b   : > { %v2532_v62 = vpop.eup %2531 }
 0x61c   : > { %v1049_v2 = vmul.f32 %v2532_v62, %v2528_v47 }
 0x61e   : > { %v1050_v3 = vpack.c.bf16 %v1049_v2, %v1048_v0 }
 0x620   : > { %2347 = vmatmul.mubr.msk.bf16.vlgmr.msra.gmra.mrb[16].mxu1 %vm710_vm4, %v1050_v3 }
 0x621   : > { %2357 = vmatpush3.bf16.msra.mxu1 %v1150_v4  ;;  %2358 = vmatprep.mubr.msk.bf16.mxu1 %vm2633_vm0, %v2632_v1  ;;  %v2164_v4 = vld [vmem:[%s3140_s8 + $0x2] ss:$0 sm:$0xff] }
 0x622   : > { %2370 = vmatprep.subr.bf16.mxu1 %v2632_v1 }
 0x628   : > { %2359 = vmatmul.mubr.msk.bf16.vlgmr.msra.gmra.mrb[20].mxu1 %vm662_vm2, %v778_v17 }
 0x629   : > { %2371 = vmatpush3.bf16.msra.mxu1 %v2504_v7  ;;  %2374 = vmatprep.mubr.msk.bf16.mxu1 %vm2633_vm0, %v2632_v1 }
 0x62a   : > { %2372 = vmatprep.subr.bf16.mxu1 %v2632_v1 }
 0x62d   : > { %2373 = vmatpush3.bf16.msra.mxu1 %v2505_v8 }
 0x62e   : > { %2386 = vmatprep.subr.bf16.mxu1 %v2632_v1 }
 0x630   : > { %2375 = vmatmul.mubr.msk.bf16.vlgmr.msra.gmra.mrb[24].mxu1 %vm478_vm1, %v2787_v5 }
 0x631   : > { %2388 = vmatprep.mubr.msk.bf16.mxu1 %vm2633_vm0, %v2632_v1 }
 0x6f3   : > { %v1088_v9 = vpop.f32.mrb[16].mxu1 }
 0x6f4   : > { %v2348_v10 = vpop.f32.mrb[17].mxu1 }
 0x6f5   : > { %v1091_v11 = vpop.f32.mrb[18].mxu1 }
 0x6f6   : > { %v1095_v13 = vpack.c.bf16 %v1091_v11, %v1088_v9  ;;  %v2349_v14 = vpop.f32.mrb[19].mxu1  ;;  %v2170_v11 = vld [vmem:[%s3141_s9 + $0x8] sm:$0xf] }
 0x6f8   : > { %2353 = vmatmul.mubr.msk.bf16.vlgmr.msra.gmra.mrb[20].mxu0 %vm662_vm2, %v1095_v13 }
 0x6f9   : > { %2363 = vmatpush3.bf16.msra.mxu0 %v2506_v12  ;;  %2366 = vmatprep.mubr.msk.bf16.mxu0 %vm2633_vm0, %v2632_v1  ;;  %v1515_v12 = vsel %vm1101_vm5, %v2170_v11, 0 }
 0x6fa   : > { %2364 = vmatprep.subr.bf16.mxu0 %v2632_v1 }
 0x6fb   : > { %v1186_v16 = vpop.f32.mrb[20].mxu1 }
 0x6fc   : > { %v2360_v17 = vpop.f32.mrb[21].mxu1 }
 0x6fd   : > { %v1189_v18 = vpop.f32.mrb[22].mxu1  ;;  %2365 = vmatpush3.bf16.msra.mxu0 %v2507_v15 }
 0x6fe   : > { %v2361_v19 = vpop.f32.mrb[23].mxu1  ;;  %2378 = vmatprep.subr.bf16.mxu0 %v2632_v1 }
 0x700   : > { %2367 = vmatmul.mubr.msk.bf16.vlgmr.msra.gmra.mrb[24].mxu0 %vm478_vm1, %v2789_v6 }
 0x701   : > { %2382 = vmatprep.mubr.msk.bf16.mxu0 %vm2633_vm0, %v2632_v1  ;;  %2379 = vmatpush3.bf16.msra.mxu0 %v2508_v44 }
 0x702   : > { %2380 = vmatprep.subr.bf16.mxu0 %v2632_v1 }
 0x703   : > { %v1319_v21 = vpop.f32.mrb[24].mxu1 }
 0x704   : > { %v1320_v22 = vadd.f32 %v2155_v20, %v1319_v21  ;;  %v2376_v23 = vpop.f32.mrb[25].mxu1  ;;  %v2513_v21 = vld [vmem:[%s3135_s3 + $0x38] sm:$0xff]  }
 0x705   : > { %v1322_v24 = vpop.f32.mrb[26].mxu1  ;;  %2381 = vmatpush3.bf16.msra.mxu0 %v2509_v45 }
 0x706   : > { %v1323_v25 = vadd.f32 %v2155_v20, %v1322_v24  ;;  %v2377_v26 = vpop.f32.mrb[27].mxu1  ;;  %2392 = vmatprep.subr.bf16.mxu0 %v2632_v1  ;;  %v2512_v20 = vld [vmem:[%s3135_s3 + $0x30] sm:$0xff]  }
 0x708   : > { %v1326_v27 = vpack.c.bf16 %v1323_v25, %v1320_v22  ;;  %2383 = vmatmul.mubr.msk.bf16.vlgmr.msra.gmra.mrb[28].mxu0 %vm478_vm1, %v2787_v5  ;;  %v2510_v25 = vld [vmem:[%s3137_s5 + $0x30] sm:$0xff]  }
 0x709   : > { %2394 = vmatprep.mubr.msk.bf16.mxu0 %vm2633_vm0, %v2632_v1 }
 0x70a   : > { %v1398_v28 = vsel %vm662_vm2, %v1326_v27, 0 }
 0x70b   : > { %2387 = vmatpush3.bf16.xpose.msra.mxu1 %v1398_v28  ;;  %v2511_v28 = vld [vmem:[%s3137_s5 + $0x38] sm:$0xff]  }
 0x70c   : > { %2398 = vmatprep.subr.bf16.mxu1 %v2632_v1 }
 0x7cb   : > { %v1139_v30 = vpop.f32.mrb[20].mxu0 }
 0x7cc   : > { %v2954_v31 = vadd.f32 %v1186_v16, %v1139_v30  ;;  %v2354_v32 = vpop.f32.mrb[21].mxu0  ;;  %v2177_v30 = vld [vmem:[%s3136_s4 + $0x3] ss:$0 sm:$0xff] }
 0x7cd   : > { %v1142_v33 = vpop.f32.mrb[22].mxu0 }
 0x7ce   : > { %v2956_v34 = vadd.f32 %v1189_v18, %v1142_v33  ;;  %v2355_v35 = vpop.f32.mrb[23].mxu0 }
 0x7d3   : > { %v1252_v37 = vpop.f32.mrb[24].mxu0 }
 0x7d4   : > { %v2368_v38 = vpop.f32.mrb[25].mxu0  ;;  %v1253_v40 = vadd.f32 %v2146_v36, %v1252_v37 }
 0x7d5   : > { %v1255_v39 = vpop.f32.mrb[26].mxu0 }
 0x7d6   : > { %v1256_v41 = vadd.f32 %v2146_v36, %v1255_v39  ;;  %v2369_v42 = vpop.f32.mrb[27].mxu0 }
 0x7d8   : > { %v1259_v43 = vpack.c.bf16 %v1256_v41, %v1253_v40 }
 0x7da   : > { %2389 = vmatmul.mubr.msk.bf16.vlgmr.msra.gmra.mrb[28].mxu1 %vm662_vm2, %v1259_v43 }
 0x7db   : > { %2400 = vmatprep.mubr.msk.bf16.mxu1 %vm2633_vm0, %v2632_v1  ;;  %v1386_v0 = vpop.f32.mrb[28].mxu0  ;;  %2399 = vmatpush3.bf16.msra.mxu1 %v1515_v12  ;;  %v2195_v12 = vld [vmem:[%s3140_s8 + $0x3] ss:$0 sm:$0xff] }
 0x7dc   : > { %v2384_v2 = vpop.f32.mrb[29].mxu0  ;;  %v1387_v8 = vadd.f32 %v2164_v4, %v1386_v0  ;;  %2412 = vmatprep.subr.bf16.mxu1 %v2632_v1 }
 0x7dd   : > { %v1389_v3 = vpop.f32.mrb[30].mxu0 }
 0x7de   : > { %v2385_v7 = vpop.f32.mrb[31].mxu0  ;;  %v1390_v9 = vadd.f32 %v2164_v4, %v1389_v3 }
 0x7e0   : > { %v1393_v10 = vpack.c.bf16 %v1390_v9, %v1387_v8 }
 0x7e2   : > { %2393 = vmatpush3.bf16.msra.mxu0 %v1393_v10 }
 0x7e3   : > { %2404 = vmatprep.subr.bf16.mxu0 %v2632_v1 }
 0x8ad   : > { %v1434_v46 = vpop.f32.mrb[28].mxu1 }
 0x8ae   : > { %v1435_v47 = vadd.f32 %v1434_v46, %v2825_v29  ;;  %v2390_v48 = vpop.f32.mrb[29].mxu1  ;;  %v2186_v46 = vld [vmem:[%s3138_s6 + $0x3] ss:$0 sm:$0xff] }
 0x8af   : > { %v1437_v49 = vpop.f32.mrb[30].mxu1 }
 0x8b0   : > { %v1438_v50 = vadd.f32 %v1437_v49, %v2825_v29  ;;  %v2391_v51 = vpop.f32.mrb[31].mxu1  ;;  %v1441_v52 = vsel %vm710_vm4, %v1435_v47, -inf }
 0x8b1   : > { %1442 = vmax.xlane.f32.xlu0 %v1441_v52 }
 0x8b2   : > { %v1444_v53 = vsel %vm710_vm4, %v1438_v50, -inf }
 0x8b3   : > { %1445 = vmax.xlane.f32.xlu1 %v1444_v53 }
 0x93e   : > { %v1443_v54 = vpop.xlane.xlu0 %1442 }
 0x93f   : > { %v1447_v55 = vsub.f32 %v1435_v47, %v1443_v54  ;;  %v2515_v54 = vld [vmem:[%s3139_s7 + $0x38] sm:$0xff]  }
 0x940   : > { %v1446_v56 = vpop.xlane.xlu1 %1445 }
 0x941   : > { %v1449_v57 = vmul.f32 1.442695, %v1447_v55  ;;  %v1448_v58 = vsub.f32 %v1438_v50, %v1446_v56 }
 0x943   : > { %2533 = vpow2.f32 %v1449_v57  ;;  %v1451_v59 = vmul.f32 1.442695, %v1448_v58 }
 0x945   : > { %2535 = vpow2.f32 %v1451_v59 }
 0x94d   : > { %v2534_v60 = vpop.eup %2533 }
 0x94e   : > { %v1453_v61 = vsel %vm710_vm4, %v2534_v60, 0.0 }
 0x94f   : > { %v2536_v62 = vpop.eup %2535  ;;  %1454 = vadd.xlane.f32.xlu0 %v1453_v61 }
 0x950   : > { %v1456_v63 = vsel %vm710_vm4, %v2536_v62, 0.0 }
 0x951   : > { %1457 = vadd.xlane.f32.xlu1 %v1456_v63 }
 0x9dc   : > { %v1455_v13 = vpop.xlane.xlu0 %1454 }
 0x9dd   : > { %2537 = vrcp.f32 %v1455_v13 }
 0x9de   : > { %v1458_v14 = vpop.xlane.xlu1 %1457 }
 0x9df   : > { %2539 = vrcp.f32 %v1458_v14 }
 0x9e7   : > { %v2538_v15 = vpop.eup %2537 }
 0x9e8   : > { %v1461_v17 = vmul.f32 %v2538_v15, %v2534_v60 }
 0x9e9   : > { %v2540_v16 = vpop.eup %2539 }
 0x9ea   : > { %v1462_v18 = vmul.f32 %v2540_v16, %v2536_v62 }
 0x9ec   : > { %v1463_v19 = vpack.c.bf16 %v1462_v18, %v1461_v17  ;;  %v2201_v17 = vld [vmem:[%s3141_s9 + $0xc] sm:$0xf] }
 0x9ed   : > { %v1882_v18 = vsel %vm1101_vm5, %v2201_v17, 0 }
 0x9ee   : > { %2395 = vmatmul.mubr.msk.bf16.vlgmr.msra.gmra.mrb[32].mxu0 %vm710_vm4, %v1463_v19 }
 0x9ef   : > { %2408 = vmatprep.mubr.msk.bf16.mxu0 %vm2633_vm0, %v2632_v1  ;;  %2405 = vmatpush3.bf16.msra.mxu0 %v2512_v20 }
 0x9f0   : > { %2406 = vmatprep.subr.bf16.mxu0 %v2632_v1 }
 0x9f3   : > { %2407 = vmatpush3.bf16.msra.mxu0 %v2513_v21 }
 0x9f4   : > { %2420 = vmatprep.subr.bf16.mxu0 %v2632_v1 }
 0x9f6   : > { %2409 = vmatmul.mubr.msk.bf16.vlgmr.msra.gmra.mrb[36].mxu0 %vm478_vm1, %v2789_v6 }
 0x9f7   : > { %2424 = vmatprep.mubr.msk.bf16.mxu0 %vm2633_vm0, %v2632_v1 }
 0xac1   : > { %v1501_v22 = vpop.f32.mrb[32].mxu0 }
 0xac2   : > { %v2396_v23 = vpop.f32.mrb[33].mxu0 }
 0xac3   : > { %v1504_v24 = vpop.f32.mrb[34].mxu0 }
 0xac4   : > { %v1508_v26 = vpack.c.bf16 %v1504_v24, %v1501_v22  ;;  %v2397_v27 = vpop.f32.mrb[35].mxu0 }
 0xac6   : > { %2401 = vmatmul.mubr.msk.bf16.vlgmr.msra.gmra.mrb[32].mxu1 %vm662_vm2, %v1508_v26 }
 0xac7   : > { %2413 = vmatpush3.bf16.msra.mxu1 %v2510_v25  ;;  %2416 = vmatprep.mubr.msk.bf16.mxu1 %vm2633_vm0, %v2632_v1 }
 0xac8   : > { %2414 = vmatprep.subr.bf16.mxu1 %v2632_v1 }
 0xac9   : > { %v1619_v32 = vpop.f32.mrb[36].mxu0 }
 0xaca   : > { %v1620_v33 = vadd.f32 %v2177_v30, %v1619_v32  ;;  %v2410_v35 = vpop.f32.mrb[37].mxu0 }
 0xacb   : > { %2415 = vmatpush3.bf16.msra.mxu1 %v2511_v28  ;;  %v1622_v36 = vpop.f32.mrb[38].mxu0  ;;  %v2203_v35 = vld [vmem:[%s3142_s10] ss:$0 sm:$0xff] }
 0xacc   : > { %2428 = vmatprep.subr.bf16.mxu1 %v2632_v1  ;;  %v1623_v37 = vadd.f32 %v2177_v30, %v1622_v36  ;;  %v2411_v38 = vpop.f32.mrb[39].mxu0 }
 0xacd   : > { %v1936_v38 = vunpack.c.l.bf16 %v2789_v6 }
 0xace   : > { %2417 = vmatmul.mubr.msk.bf16.vlgmr.msra.gmra.mrb[36].mxu1 %vm478_vm1, %v2787_v5  ;;  %v1626_v39 = vpack.c.bf16 %v1623_v37, %v1620_v33 }
 0xacf   : > { %2430 = vmatprep.mubr.msk.bf16.mxu1 %vm2633_vm0, %v2632_v1 }
 0xb99   : > { %v1551_v40 = vpop.f32.mrb[32].mxu1 }
 0xb9a   : > { %v3025_v41 = vadd.f32 %v1551_v40, %v2954_v31  ;;  %v2402_v42 = vpop.f32.mrb[33].mxu1 }
 0xb9b   : > { %v1554_v43 = vpop.f32.mrb[34].mxu1 }
 0xb9c   : > { %v3028_v44 = vadd.f32 %v1554_v43, %v2956_v34  ;;  %v2403_v45 = vpop.f32.mrb[35].mxu1  ;;  %v2514_v34 = vld [vmem:[%s3139_s7 + $0x30] sm:$0xff]  }
 0xb9d   : > { %2421 = vmatpush3.bf16.msra.mxu0 %v2514_v34  ;;  %v1937_v45 = vunpack.c.h.bf16 %v2789_v6 }
 0xb9e   : > { %2422 = vmatprep.subr.bf16.mxu0 %v2632_v1 }
 0xba1   : > { %v1686_v47 = vpop.f32.mrb[36].mxu1  ;;  %2423 = vmatpush3.bf16.msra.mxu0 %v2515_v54 }
 0xba2   : > { %v2418_v48 = vpop.f32.mrb[37].mxu1  ;;  %v1687_v50 = vadd.f32 %v2186_v46, %v1686_v47  ;;  %2434 = vmatprep.subr.bf16.mxu0 %v2632_v1 }
 0xba3   : > { %v1689_v49 = vpop.f32.mrb[38].mxu1 }
 0xba4   : > { %v1690_v51 = vadd.f32 %v2186_v46, %v1689_v49  ;;  %v2419_v52 = vpop.f32.mrb[39].mxu1  ;;  %2425 = vmatmul.mubr.msk.bf16.vlgmr.msra.gmra.mrb[40].mxu0 %vm478_vm1, %v2787_v5 }
 0xba5   : > { %2436 = vmatprep.mubr.msk.bf16.mxu0 %vm2633_vm0, %v2632_v1 }
 0xba6   : > { %v1693_v53 = vpack.c.bf16 %v1690_v51, %v1687_v50 }
 0xba8   : > { %v1765_v31 = vsel %vm662_vm2, %v1693_v53, 0 }
 0xba9   : > { %2429 = vmatpush3.bf16.xpose.msra.mxu1 %v1765_v31 }
 0xbaa   : > { %2440 = vmatprep.subr.bf16.mxu1 %v2632_v1 }
 0xbb0   : > { %2431 = vmatmul.mubr.msk.bf16.vlgmr.msra.gmra.mrb[40].mxu1 %vm662_vm2, %v1626_v39 }
 0xbb1   : > { %2442 = vmatprep.mubr.msk.bf16.mxu1 %vm2633_vm0, %v2632_v1  ;;  %2441 = vmatpush3.bf16.msra.mxu1 %v1882_v18 }
 0xc77   : > { %v1753_v9 = vpop.f32.mrb[40].mxu0 }
 0xc78   : > { %v2426_v10 = vpop.f32.mrb[41].mxu0  ;;  %v1754_v14 = vadd.f32 %v2195_v12, %v1753_v9 }
 0xc79   : > { %v1756_v11 = vpop.f32.mrb[42].mxu0 }
 0xc7a   : > { %v2427_v13 = vpop.f32.mrb[43].mxu0  ;;  %v1757_v15 = vadd.f32 %v2195_v12, %v1756_v11 }
 0xc7c   : > { %v1760_v16 = vpack.c.bf16 %v1757_v15, %v1754_v14 }
 0xc7e   : > { %2435 = vmatpush3.bf16.msra.mxu0 %v1760_v16 }
 0xc83   : > { %v1801_v55 = vpop.f32.mrb[40].mxu1 }
 0xc84   : > { %v1802_v56 = vadd.f32 %v1801_v55, %v2825_v29  ;;  %v2432_v57 = vpop.f32.mrb[41].mxu1 }
 0xc85   : > { %v1804_v58 = vpop.f32.mrb[42].mxu1 }
 0xc86   : > { %v1805_v59 = vadd.f32 %v1804_v58, %v2825_v29  ;;  %v2433_v60 = vpop.f32.mrb[43].mxu1  ;;  %v1808_v61 = vsel %vm710_vm4, %v1802_v56, -inf }
 0xc87   : > { %1809 = vmax.xlane.f32.xlu0 %v1808_v61 }
 0xc88   : > { %v1811_v62 = vsel %vm710_vm4, %v1805_v59, -inf }
 0xc89   : > { %1812 = vmax.xlane.f32.xlu1 %v1811_v62 }
 0xd14   : > { %v1810_v63 = vpop.xlane.xlu0 %1809 }
 0xd15   : > { %v1814_v0 = vsub.f32 %v1802_v56, %v1810_v63  ;;  %v2204_v63 = vld [vmem:[%s3143_s11] ss:$0 sm:$0xff] }
 0xd16   : > { %v1813_v5 = vpop.xlane.xlu1 %1812 }
 0xd17   : > { %v1816_v2 = vmul.f32 1.442695, %v1814_v0  ;;  %v1815_v3 = vsub.f32 %v1805_v59, %v1813_v5 }
 0xd19   : > { %2541 = vpow2.f32 %v1816_v2  ;;  %v1818_v1 = vmul.f32 1.442695, %v1815_v3  ;;  %v2205_v2 = vld [vmem:[%s3144_s12] ss:$0 sm:$0xff] }
 0xd1b   : > { %2543 = vpow2.f32 %v1818_v1 }
 0xd23   : > { %v2542_v4 = vpop.eup %2541 }
 0xd24   : > { %v1820_v7 = vsel %vm710_vm4, %v2542_v4, 0.0 }
 0xd25   : > { %v2544_v8 = vpop.eup %2543  ;;  %1821 = vadd.xlane.f32.xlu0 %v1820_v7 }
 0xd26   : > { %v1823_v29 = vsel %vm710_vm4, %v2544_v8, 0.0 }
 0xd27   : > { %1824 = vadd.xlane.f32.xlu1 %v1823_v29 }
 0xdb2   : > { %v1822_v19 = vpop.xlane.xlu0 %1821 }
 0xdb3   : > { %2545 = vrcp.f32 %v1822_v19 }
 0xdb4   : > { %v1825_v20 = vpop.xlane.xlu1 %1824 }
 0xdb5   : > { %2547 = vrcp.f32 %v1825_v20 }
 0xdbd   : > { %v2546_v21 = vpop.eup %2545 }
 0xdbe   : > { %v1828_v23 = vmul.f32 %v2546_v21, %v2542_v4 }
 0xdbf   : > { %v2548_v22 = vpop.eup %2547 }
 0xdc0   : > { %v1829_v24 = vmul.f32 %v2548_v22, %v2544_v8 }
 0xdc2   : > { %v1830_v25 = vpack.c.bf16 %v1829_v24, %v1828_v23 }
 0xdc4   : > { %2437 = vmatmul.mubr.msk.bf16.vlgmr.msra.gmra.mrb[44].mxu0 %vm710_vm4, %v1830_v25 }
 0xe97   : > { %v1868_v26 = vpop.f32.mrb[44].mxu0 }
 0xe98   : > { %v2438_v27 = vpop.f32.mrb[45].mxu0 }
 0xe99   : > { %v1871_v28 = vpop.f32.mrb[46].mxu0 }
 0xe9a   : > { %v1875_v30 = vpack.c.bf16 %v1871_v28, %v1868_v26  ;;  %v2439_v32 = vpop.f32.mrb[47].mxu0 }
 0xe9c   : > { %2443 = vmatmul.mubr.msk.bf16.vlgmr.msra.gmra.mrb[44].mxu1 %vm662_vm2, %v1875_v30 }
 0xf6f   : > { %v1918_v33 = vpop.f32.mrb[44].mxu1 }
 0xf70   : > { %v1925_v36 = vadd.f32 %v1918_v33, %v3025_v41  ;;  %v2444_v37 = vpop.f32.mrb[45].mxu1 }
 0xf71   : > { %v1921_v39 = vpop.f32.mrb[46].mxu1 }
 0xf72   : > { %v1934_v40 = vadd.f32 %v2203_v35, %v1925_v36  ;;  %v1926_v42 = vadd.f32 %v1921_v39, %v3028_v44  ;;  %v2445_v43 = vpop.f32.mrb[47].mxu1 }
 0xf74   : > { %v1935_v46 = vadd.f32 %v2203_v35, %v1926_v42  ;;  %v1938_v47 = vadd.f32 %v1936_v38, %v1934_v40 }
 0xf76   : > { %v1940_v48 = vsel %vm478_vm1, %v1938_v47, 0.0  ;;  %v1939_v49 = vadd.f32 %v1937_v45, %v1935_v46 }
 0xf77   : > { %1941 = vadd.xlane.f32.xlu0 %v1940_v48 }
 0xf78   : > { %v1943_v50 = vsel %vm478_vm1, %v1939_v49, 0.0 }
 0xf79   : > { %1944 = vadd.xlane.f32.xlu1 %v1943_v50 }
0x1004   : > { %v1942_v41 = vpop.xlane.xlu0 %1941 }
0x1005   : > { %v1947_v51 = vmul.f32 0.03125, %v1942_v41 }
0x1006   : > { %v1945_v52 = vpop.xlane.xlu1 %1944 }
0x1007   : > { %v1949_v53 = vsub.f32 %v1938_v47, %v1947_v51  ;;  %v1948_v31 = vmul.f32 0.03125, %v1945_v52 }
0x1009   : > { %v1950_v34 = vsub.f32 %v1939_v49, %v1948_v31  ;;  %v1951_v44 = vmul.f32 %v1949_v53, %v1949_v53 }
0x100b   : > { %v1953_v54 = vsel %vm478_vm1, %v1951_v44, 0.0  ;;  %v1952_v6 = vmul.f32 %v1950_v34, %v1950_v34 }
0x100c   : > { %1954 = vadd.xlane.f32.xlu0 %v1953_v54 }
0x100d   : > { %v1956_v55 = vsel %vm478_vm1, %v1952_v6, 0.0 }
0x100e   : > { %1957 = vadd.xlane.f32.xlu1 %v1956_v55 }
0x1099   : > { %v1955_v56 = vpop.xlane.xlu0 %1954 }
0x109a   : > { %v1959_v57 = vmul.f32 0.03125, %v1955_v56 }
0x109b   : > { %v1958_v58 = vpop.xlane.xlu1 %1957 }
0x109c   : > { %v1961_v59 = vadd.f32 1e-06, %v1959_v57  ;;  %v1960_v60 = vmul.f32 0.03125, %v1958_v58 }
0x109e   : > { %2549 = vrsqrt.f32 %v1961_v59  ;;  %v1962_v61 = vadd.f32 1e-06, %v1960_v60 }
0x10a0   : > { %2551 = vrsqrt.f32 %v1962_v61 }
0x10a8   : > { %v2550_v62 = vpop.eup %2549 }
0x10a9   : > { %v1965_v0 = vmul.f32 %v2550_v62, %v1949_v53 }
0x10aa   : > { %v2552_v5 = vpop.eup %2551 }
0x10ab   : > { %v1974_v3 = vmul.f32 %v2204_v63, %v1965_v0  ;;  %v1966_v1 = vmul.f32 %v2552_v5, %v1950_v34 }
0x10ad   : > { %v1983_v4 = vadd.f32 %v2205_v2, %v1974_v3  ;;  %v1975_v7 = vmul.f32 %v2204_v63, %v1966_v1 }
0x10af   : > { %v1984_v8 = vadd.f32 %v2205_v2, %v1975_v7  ;;  %v2215_v29 = vpack.c.bf16 %v1983_v4, %v1983_v4 }
0x10b1   : > { %v2216_v9 = vpack.c.bf16 %v1984_v8, %v1984_v8  ;;  %1994 = vst.msk [vmem:[%s428_s21] sm:$0xf] %vm1993_vm6, %v2215_v29 }
0x10b3   : > { %1995 = vst.msk [vmem:[%s428_s21 + $0x4] sm:$0xf] %vm1993_vm6, %v2216_v9 }
0x10b4   : > { %2578 = shalt.err (!%p2575_p8)
}
0x10b5   : > { %s2579_s25 = scalar_lea.hbm %s3087_s28, 128  ;;  %s2583_s27 = scalar_lea.hbm %s3145_s13, 256 }
0x10b6   : > { %p2580_p9 = scmp.ne.s32.totalorder %s3087_s28, %s2579_s25  ;;  %p2584_p0 = scmp.lt.u32.totalorder %s3087_s28, %s3145_s13 }
0x10b7   : > { %p2585_p1 = scmp.lt.u32.totalorder %s2583_s27, %s2579_s25  ;;  %p2587_p3 = scmp.lt.u32.totalorder %s2579_s25, %s3087_s28 }
0x10b8   : > { %p2581_p12 = pnand %p2580_p9, %p2748_p10 }
0x10b9   : > { %p2586_p2 = por %p2585_p1, %p2584_p0 }
0x10ba   : > { %p2582_p13 = pneg %p2581_p12 }
0x10bb   : > { %p2588_p4 = por %p2587_p3, %p2586_p2 }
0x10bd   : > { %p2589_p5 = pnand %p2588_p4, %p2582_p13 }
0x10bf   : > { %2592 = shalt.err (!%p2589_p5)
}
0x10c0   : > { %s2635_s16 = smov 64   ;;  %s2636_s19 = smov 4  }
0x10c1   : > { %2446 = dma.vmem_to_hbm [thread:$0]  (%p2748_p10), %s3089_s20, 128, %s3087_s28, %s3091_s29, %s2635_s16, %s2635_s16, %s2636_s19  }
0x10c2 PF: > { %p2452_p6 = scmp.ge.s32.totalorder %s2629_s15, 2  ;;  %s2025_s21 = sand.u32 1, %s2617_s30  }
0x10c3   : > { %s2026_s25 = scalar_lea.sflag [#allocation5], %s2025_s21 }
0x10c4   : > { %p2449_p7 = pnand %p2452_p6, %p2752_p11 }
0x10c6   : > { %2612 = dma.done.wait (!%p2449_p7), %s2026_s25, 128  }
0x10c7   : > { %2614 = vsyncadd (!%p2449_p7), %s2026_s25, 4294967168  ;;  %s3149_s24 = sld [smem:[#allocation8_spill]]  ;;  %p29_p8 = scmp.ge.s32.totalorder %s2735_s18, 4  }
0x10c8   : > { %s3150_s30 = smov %s2621_s14  ;;  %s3151_s14 = smov %s2625_s0 }
0x10c9   : > { %s3153_s15 = smov %s2735_s18  ;;  %31 = sbr.rel (!%p29_p8) target bundleno = 18 (0x12), region = 127 }
0x10cd   : > { %s3152_s0 = smov %s3149_s24 }
0x10d0   :  { %2031 = vsyncpa [#allocation5], 1 }
0x10d1   :  { %2033 = vsyncpa [#allocation5 + $0x1], 1 }

</bundles_post_ra>
